<compile_context>
chip_gen: v7x
topology: tpu7x:2x2x1
jax: 0.10.0
libtpu: 0.0.40
codegen_flags: <defaults>
</compile_context>

<pallas_src>
import functools
import math

import jax
import jax.numpy as jnp
from jax import lax
from jax.experimental import pallas as pl
from jax.experimental.pallas import tpu as pltpu

# Large finite negative instead of -inf: exp underflows to exactly 0 for masked
# keys while avoiding exp(-inf - -inf) = NaN bookkeeping.
NEG_INF = -1e30


# ---------------------------------------------------------------------------
# Kernel 1: fused Q / K / V projections (f32 in, bf16 cast in-kernel, bf16 out)
# ---------------------------------------------------------------------------
def _qkv_proj_kernel(q_ref, k_ref, v_ref,
                     wq_ref, bq_ref, wk_ref, bk_ref, wv_ref, bv_ref,
                     qo_ref, ko_ref, vo_ref):
    def proj(x_ref, w_ref, b_ref, o_ref):
        x = x_ref[0].astype(jnp.bfloat16)            # in-kernel VPU cast
        acc = jnp.dot(x, w_ref[...], preferred_element_type=jnp.float32)
        o_ref[0] = (acc + b_ref[...]).astype(o_ref.dtype)

    proj(q_ref, wq_ref, bq_ref, qo_ref)
    proj(k_ref, wk_ref, bk_ref, ko_ref)
    proj(v_ref, wv_ref, bv_ref, vo_ref)


def _qkv_projection(q, k, v, wq, bq, wk, bk, wv, bv, *, tile_t):
    N, T, D = q.shape
    HD = wq.shape[1]

    x_spec = pl.BlockSpec((1, tile_t, D), lambda n, r: (n, r, 0))
    w_spec = pl.BlockSpec((D, HD), lambda n, r: (0, 0))
    b_spec = pl.BlockSpec((1, HD), lambda n, r: (0, 0))
    o_spec = pl.BlockSpec((1, tile_t, HD), lambda n, r: (n, r, 0))
    out_sd = jax.ShapeDtypeStruct((N, T, HD), jnp.bfloat16)

    return pl.pallas_call(
        _qkv_proj_kernel,
        out_shape=(out_sd, out_sd, out_sd),
        grid_spec=pltpu.PrefetchScalarGridSpec(
            num_scalar_prefetch=0,
            grid=(N, T // tile_t),
            in_specs=[x_spec, x_spec, x_spec,
                      w_spec, b_spec, w_spec, b_spec, w_spec, b_spec],
            out_specs=(o_spec, o_spec, o_spec)),
        compiler_params=pltpu.CompilerParams(
            dimension_semantics=("parallel", "parallel"),
            vmem_limit_bytes=32 * 1024 * 1024),
    )(q, k, v, wq, bq, wk, bk, wv, bv)


# ---------------------------------------------------------------------------
# Kernel 2: triangular-grid flash attention + fused output projection
# ---------------------------------------------------------------------------
def _flash_attn_kernel(qi_tbl, ki_tbl, pad_any,          # SMEM scalar prefetch
                       pad_ref, q_ref, k_ref, v_ref, wfc_ref, bfc_ref,
                       o_ref,
                       m_scr, l_scr, acc_scr,
                       *, n_heads, d_k, tq, tk, scale):
    n = pl.program_id(0)
    p = pl.program_id(1)
    qi = qi_tbl[p]            # query-tile index of this lower-triangular pair
    ki = ki_tbl[p]            # key-tile index  (ki <= qi by construction)

    @pl.when(ki == 0)
    def _init():
        m_scr[...] = jnp.full(m_scr.shape, NEG_INF, jnp.float32)
        l_scr[...] = jnp.zeros(l_scr.shape, jnp.float32)
        acc_scr[...] = jnp.zeros(acc_scr.shape, jnp.float32)

    def online_update(mask):
        # Per-head slices of the lane-dense (tq, H*d_k) tiles; H is small and
        # static so the loop is fully unrolled.  All matmuls run on the MXU
        # with f32 accumulation; softmax bookkeeping stays f32 (v5e-safe).
        for h in range(n_heads):
            sl = slice(h * d_k, (h + 1) * d_k)
            qh = q_ref[0, :, sl]                         # (tq, dk) bf16
            kh = k_ref[0, :, sl]                         # (tk, dk) bf16
            vh = v_ref[0, :, sl]                         # (tk, dk) bf16

            s = lax.dot_general(qh, kh, (((1,), (1,)), ((), ())),
                                preferred_element_type=jnp.float32) * scale
            if mask is not None:
                s = jnp.where(mask, s, NEG_INF)

            m_prev = m_scr[h]                            # (tq, 1)
            m_new = jnp.maximum(m_prev, jnp.max(s, axis=-1, keepdims=True))
            alpha = jnp.exp(m_prev - m_new)
            # NOTE: on v6e/v7x the exp below can be done in bf16 on the EUP;
            # kept f32 here so the same kernel stays fast/correct on v5e.
            pexp = jnp.exp(s - m_new)                    # (tq, tk) f32
            l_scr[h] = alpha * l_scr[h] + jnp.sum(pexp, axis=-1, keepdims=True)
            pv = jnp.dot(pexp.astype(jnp.bfloat16), vh,
                         preferred_element_type=jnp.float32)      # (tq, dk)
            acc_scr[:, sl] = alpha * acc_scr[:, sl] + pv
            m_scr[h] = m_new

    is_diag = qi == ki
    tile_has_pad = pad_any[n, ki] != 0
    need_mask = jnp.logical_or(is_diag, tile_has_pad)

    # Masked path: only diagonal tiles and pad-containing key tiles.
    @pl.when(need_mask)
    def _masked():
        row = qi * tq + lax.broadcasted_iota(jnp.int32, (tq, tk), 0)
        col = ki * tk + lax.broadcasted_iota(jnp.int32, (tq, tk), 1)
        ok = jnp.logical_and(row >= col, pad_ref[0] != 0.0)        # (tq, tk)
        online_update(ok)

    # Interior, fully-visible tiles: no iota / compare / where work at all.
    @pl.when(jnp.logical_not(need_mask))
    def _plain():
        online_update(None)

    # The diagonal tile is the last key tile for this query tile -> finalize.
    @pl.when(is_diag)
    def _finalize():
        for h in range(n_heads):
            sl = slice(h * d_k, (h + 1) * d_k)
            inv = pl.reciprocal(l_scr[h], approx=True)             # EUP
            acc_scr[:, sl] = acc_scr[:, sl] * inv
        a = acc_scr[...].astype(jnp.bfloat16)                      # (tq, HD)
        out = jnp.dot(a, wfc_ref[...], preferred_element_type=jnp.float32)
        o_ref[0] = (out + bfc_ref[...]).astype(o_ref.dtype)


def _flash_attention(qi_tbl, ki_tbl, pad_any, pad3, qp, kp, vp, wfc, bfc,
                     *, n_heads, d_k, d_model, tq, tk):
    N, T, HD = qp.shape
    n_pairs = int(qi_tbl.shape[0])
    nq = T // tq
    scale = 1.0 / math.sqrt(d_k)

    kernel = functools.partial(_flash_attn_kernel, n_heads=n_heads, d_k=d_k,
                               tq=tq, tk=tk, scale=scale)

    # Data-dependent index maps driven by the prefetched triangular tables.
    q_spec = pl.BlockSpec((1, tq, HD), lambda n, p, qt, kt, pa: (n, qt[p], 0))
    kv_spec = pl.BlockSpec((1, tk, HD), lambda n, p, qt, kt, pa: (n, kt[p], 0))
    pad_spec = pl.BlockSpec((1, 1, tk), lambda n, p, qt, kt, pa: (n, 0, kt[p]))
    wfc_spec = pl.BlockSpec((HD, d_model), lambda n, p, qt, kt, pa: (0, 0))
    bfc_spec = pl.BlockSpec((1, d_model), lambda n, p, qt, kt, pa: (0, 0))
    o_spec = pl.BlockSpec((1, tq, d_model), lambda n, p, qt, kt, pa: (n, qt[p], 0))

    cost = pl.CostEstimate(
        flops=int(4 * N * n_heads * tq * tk * d_k * n_pairs
                  + 2 * N * T * HD * d_model),
        transcendentals=int(N * n_heads * tq * tk * n_pairs),
        bytes_accessed=int(N * nq * tq * HD * 2            # q tiles (once/run)
                           + 2 * N * n_pairs * tk * HD * 2  # k and v tiles
                           + N * T * d_model * 2            # bf16 output
                           + HD * d_model * 2))

    return pl.pallas_call(
        kernel,
        out_shape=jax.ShapeDtypeStruct((N, T, d_model), jnp.bfloat16),
        grid_spec=pltpu.PrefetchScalarGridSpec(
            num_scalar_prefetch=3,
            grid=(N, n_pairs),
            in_specs=[pad_spec, q_spec, kv_spec, kv_spec, wfc_spec, bfc_spec],
            out_specs=o_spec,
            scratch_shapes=[pltpu.VMEM((n_heads, tq, 1), jnp.float32),   # m
                            pltpu.VMEM((n_heads, tq, 1), jnp.float32),   # l
                            pltpu.VMEM((tq, HD), jnp.float32)]),         # acc
        compiler_params=pltpu.CompilerParams(
            # Batch axis parallel (even split across v7x's 2 TCs for even N);
            # the flattened triangular pair axis carries the online-softmax
            # reduction, so it stays "arbitrary".
            dimension_semantics=("parallel", "arbitrary"),
            vmem_limit_bytes=32 * 1024 * 1024),
        cost_estimate=cost,
    )(qi_tbl, ki_tbl, pad_any, pad3, qp, kp, vp, wfc, bfc)


# ---------------------------------------------------------------------------
# Public wrapper (mirrors CausalSelfAttention.forward)
# ---------------------------------------------------------------------------
def causal_self_attention(q, k, v, params, *, n_heads, d_k, pad_mask=None,
                          attn_tile=256):
    """q, k, v: (N, T, d_model) float32.  pad_mask: (N, T) or None.
    Returns (N, T, d_model) bfloat16 (bf16 writeback halves output HBM traffic;
    numerics are already bf16-limited by the MXU operands)."""
    N, T, D = q.shape
    wq, bq, wk, bk, wv, bv, wfc, bfc = params
    HD = n_heads * d_k
    assert wq.shape == (D, HD) and wfc.shape == (HD, D)

    if pad_mask is None:
        pad_mask = jnp.ones((N, T), jnp.float32)
    pad3 = pad_mask.astype(jnp.float32).reshape(N, 1, T)

    bf16 = jnp.bfloat16

    # --- Q/K/V projections (activations stay f32 until the in-kernel cast) ---
    t_proj = T if T <= 512 else 512
    assert T % t_proj == 0, "T must be a multiple of the projection tile"
    qp, kp, vp = _qkv_projection(
        q, k, v,
        wq.astype(bf16), bq, wk.astype(bf16), bk, wv.astype(bf16), bv,
        tile_t=t_proj)

    # --- Flash attention over a lower-triangular (qi, ki) grid ---------------
    tile = T if T <= attn_tile else attn_tile        # tq == tk; sweep 256/512
    assert T % tile == 0, "T must be a multiple of the attention tile"
    nq = T // tile

    pairs_q, pairs_k = [], []
    for qi in range(nq):
        for ki in range(qi + 1):
            pairs_q.append(qi)
            pairs_k.append(ki)
    qi_tbl = jnp.array(pairs_q, dtype=jnp.int32)
    ki_tbl = jnp.array(pairs_k, dtype=jnp.int32)

    # Per-(batch, key-tile) flag: does this key tile contain any padded key?
    pad_any = (jnp.min(pad3.reshape(N, nq, tile), axis=-1) == 0).astype(jnp.int32)

    return _flash_attention(qi_tbl, ki_tbl, pad_any, pad3, qp, kp, vp,
                            wfc.astype(bf16), bfc,
                            n_heads=n_heads, d_k=d_k, d_model=D,
                            tq=tile, tk=tile)


def init_params(key, d_model, d_k, n_heads):
    HD = d_k * n_heads
    keys = jax.random.split(key, 8)

    def lin(kw, kb, fan_in, fan_out):
        w = jax.random.normal(kw, (fan_in, fan_out), jnp.float32) * 0.02
        b = jax.random.normal(kb, (1, fan_out), jnp.float32) * 0.02
        return w, b

    wq, bq = lin(keys[0], keys[1], d_model, HD)
    wk, bk = lin(keys[2], keys[3], d_model, HD)
    wv, bv = lin(keys[4], keys[5], d_model, HD)
    wfc, bfc = lin(keys[6], keys[7], HD, d_model)
    return (wq, bq, wk, bk, wv, bv, wfc, bfc)


def reference(q, k, v, params, *, n_heads, d_k, pad_mask=None):
    """Pure-JAX f32 reference mirroring the PyTorch forward exactly."""
    wq, bq, wk, bk, wv, bv, wfc, bfc = params
    N, T, _ = q.shape
    qp = q @ wq + bq
    kp = k @ wk + bk
    vp = v @ wv + bv
    qp = qp.reshape(N, T, n_heads, d_k).transpose(0, 2, 1, 3)
    kp = kp.reshape(N, T, n_heads, d_k).transpose(0, 2, 1, 3)
    vp = vp.reshape(N, T, n_heads, d_k).transpose(0, 2, 1, 3)
    s = jnp.einsum('nhtd,nhsd->nhts', qp, kp) / math.sqrt(d_k)
    if pad_mask is not None:
        s = jnp.where(pad_mask[:, None, None, :] == 0, -jnp.inf, s)
    causal = jnp.tril(jnp.ones((T, T), bool))
    s = jnp.where(causal[None, None], s, -jnp.inf)
    p = jax.nn.softmax(s, axis=-1)
    a = jnp.einsum('nhts,nhsd->nhtd', p, vp)
    a = a.transpose(0, 2, 1, 3).reshape(N, T, n_heads * d_k)
    return a @ wfc + bfc


if __name__ == "__main__":
    # Lane-dense shapes (H*d_k = d_model = 128) with T large enough to exercise
    # the multi-tile triangular grid (nq = 2 -> 3 lower-triangular pairs).
    N, T = 2, 512
    d_model, d_k, n_heads = 128, 32, 4

    key = jax.random.PRNGKey(0)
    kq, kk, kv, kparam = jax.random.split(key, 4)
    q = jax.random.normal(kq, (N, T, d_model), jnp.float32)
    k = jax.random.normal(kk, (N, T, d_model), jnp.float32)
    v = jax.random.normal(kv, (N, T, d_model), jnp.float32)
    # Trailing padding on batch 1 (like real right-padded data, so no row is
    # fully masked).
    pad_mask = jnp.ones((N, T), jnp.float32).at[1, -2:].set(0.0)

    params = init_params(kparam, d_model, d_k, n_heads)

    out = causal_self_attention(q, k, v, params,
                                n_heads=n_heads, d_k=d_k, pad_mask=pad_mask)
    out = jax.block_until_ready(out)

    ref = reference(q, k, v, params, n_heads=n_heads, d_k=d_k, pad_mask=pad_mask)
    assert out.shape == (N, T, d_model)
    out_f32 = out.astype(jnp.float32)
    # bf16 MXU operands / bf16 output with f32 accumulation -> bf16 tolerance.
    assert jnp.allclose(out_f32, ref, atol=2e-2, rtol=2e-2), (
        f"mismatch vs reference: max|diff|="
        f"{float(jnp.max(jnp.abs(out_f32 - ref))):.3e}")

    print("KERNEL_OK")
</pallas_src>

<mosaic_0001>
module attributes {stable_mosaic.version = 11 : i64} {
  func.func @_qkv_proj_kernel(%arg0: i32, %arg1: i32, %arg2: memref<1x512x128xf32, #tpu.memory_space<vmem>>, %arg3: memref<1x512x128xf32, #tpu.memory_space<vmem>>, %arg4: memref<1x512x128xf32, #tpu.memory_space<vmem>>, %arg5: memref<128x128xbf16, #tpu.memory_space<vmem>>, %arg6: memref<1x128xf32, #tpu.memory_space<vmem>>, %arg7: memref<128x128xbf16, #tpu.memory_space<vmem>>, %arg8: memref<1x128xf32, #tpu.memory_space<vmem>>, %arg9: memref<128x128xbf16, #tpu.memory_space<vmem>>, %arg10: memref<1x128xf32, #tpu.memory_space<vmem>>, %arg11: memref<1x512x128xbf16, #tpu.memory_space<vmem>>, %arg12: memref<1x512x128xbf16, #tpu.memory_space<vmem>>, %arg13: memref<1x512x128xbf16, #tpu.memory_space<vmem>>) attributes {dimension_semantics = [#tpu.dimension_semantics<parallel>, #tpu.dimension_semantics<parallel>], iteration_bounds = array<i64: 2, 1>, scalar_prefetch = 0 : i64, scratch_operands = 0 : i64, tpu.core_type = #tpu.core_type<tc>, window_params = [{transform_indices = @transform_0, window_bounds = array<i64: 1, 512, 128>}, {transform_indices = @transform_1, window_bounds = array<i64: 1, 512, 128>}, {transform_indices = @transform_2, window_bounds = array<i64: 1, 512, 128>}, {pipeline_mode = #tpu.pipeline_mode<synchronous>, transform_indices = @transform_3, window_bounds = array<i64: 128, 128>}, {pipeline_mode = #tpu.pipeline_mode<synchronous>, transform_indices = @transform_4, window_bounds = array<i64: 1, 128>}, {pipeline_mode = #tpu.pipeline_mode<synchronous>, transform_indices = @transform_5, window_bounds = array<i64: 128, 128>}, {pipeline_mode = #tpu.pipeline_mode<synchronous>, transform_indices = @transform_6, window_bounds = array<i64: 1, 128>}, {pipeline_mode = #tpu.pipeline_mode<synchronous>, transform_indices = @transform_7, window_bounds = array<i64: 128, 128>}, {pipeline_mode = #tpu.pipeline_mode<synchronous>, transform_indices = @transform_8, window_bounds = array<i64: 1, 128>}, {transform_indices = @transform_9, window_bounds = array<i64: 1, 512, 128>}, {transform_indices = @transform_10, window_bounds = array<i64: 1, 512, 128>}, {transform_indices = @transform_11, window_bounds = array<i64: 1, 512, 128>}]} {
    %c0 = arith.constant 0 : index
    %c0_0 = arith.constant 0 : index
    %c0_1 = arith.constant 0 : index
    %0 = vector.load %arg2[%c0, %c0_0, %c0_1] : memref<1x512x128xf32, #tpu.memory_space<vmem>>, vector<1x512x128xf32>
    %1 = vector.shape_cast %0 : vector<1x512x128xf32> to vector<512x128xf32>
    %2 = arith.truncf %1 : vector<512x128xf32> to vector<512x128xbf16>
    %c0_2 = arith.constant 0 : index
    %c0_3 = arith.constant 0 : index
    %3 = vector.load %arg5[%c0_2, %c0_3] : memref<128x128xbf16, #tpu.memory_space<vmem>>, vector<128x128xbf16>
    %cst = arith.constant dense<0.000000e+00> : vector<512x128xf32>
    %4 = tpu.matmul %2, %3, %cst {dimension_numbers = #tpu.dot_dimension_numbers<[1], [0], [0], [1], [0, 0, 1, 1], [], []>} : vector<512x128xbf16>, vector<128x128xbf16>, vector<512x128xf32> -> vector<512x128xf32>
    %c0_4 = arith.constant 0 : index
    %c0_5 = arith.constant 0 : index
    %5 = vector.load %arg6[%c0_4, %c0_5] : memref<1x128xf32, #tpu.memory_space<vmem>>, vector<1x128xf32>
    %6 = vector.broadcast %5 : vector<1x128xf32> to vector<512x128xf32>
    %7 = arith.addf %4, %6 : vector<512x128xf32>
    %8 = arith.truncf %7 : vector<512x128xf32> to vector<512x128xbf16>
    %c0_6 = arith.constant 0 : index
    %c0_7 = arith.constant 0 : index
    %c0_8 = arith.constant 0 : index
    %9 = vector.load %arg11[%c0_6, %c0_7, %c0_8] : memref<1x512x128xbf16, #tpu.memory_space<vmem>>, vector<1x512x128xbf16>
    %10 = vector.shape_cast %9 : vector<1x512x128xbf16> to vector<512x128xbf16>
    %11 = vector.shape_cast %8 : vector<512x128xbf16> to vector<1x512x128xbf16>
    tpu.vector_store %arg11[%c0_6, %c0_7, %c0_8], %11 {strides = array<i32>} : memref<1x512x128xbf16, #tpu.memory_space<vmem>>, vector<1x512x128xbf16>,
    %c0_9 = arith.constant 0 : index
    %c0_10 = arith.constant 0 : index
    %c0_11 = arith.constant 0 : index
    %12 = vector.load %arg3[%c0_9, %c0_10, %c0_11] : memref<1x512x128xf32, #tpu.memory_space<vmem>>, vector<1x512x128xf32>
    %13 = vector.shape_cast %12 : vector<1x512x128xf32> to vector<512x128xf32>
    %14 = arith.truncf %13 : vector<512x128xf32> to vector<512x128xbf16>
    %c0_12 = arith.constant 0 : index
    %c0_13 = arith.constant 0 : index
    %15 = vector.load %arg7[%c0_12, %c0_13] : memref<128x128xbf16, #tpu.memory_space<vmem>>, vector<128x128xbf16>
    %cst_14 = arith.constant dense<0.000000e+00> : vector<512x128xf32>
    %16 = tpu.matmul %14, %15, %cst_14 {dimension_numbers = #tpu.dot_dimension_numbers<[1], [0], [0], [1], [0, 0, 1, 1], [], []>} : vector<512x128xbf16>, vector<128x128xbf16>, vector<512x128xf32> -> vector<512x128xf32>
    %c0_15 = arith.constant 0 : index
    %c0_16 = arith.constant 0 : index
    %17 = vector.load %arg8[%c0_15, %c0_16] : memref<1x128xf32, #tpu.memory_space<vmem>>, vector<1x128xf32>
    %18 = vector.broadcast %17 : vector<1x128xf32> to vector<512x128xf32>
    %19 = arith.addf %16, %18 : vector<512x128xf32>
    %20 = arith.truncf %19 : vector<512x128xf32> to vector<512x128xbf16>
    %c0_17 = arith.constant 0 : index
    %c0_18 = arith.constant 0 : index
    %c0_19 = arith.constant 0 : index
    %21 = vector.load %arg12[%c0_17, %c0_18, %c0_19] : memref<1x512x128xbf16, #tpu.memory_space<vmem>>, vector<1x512x128xbf16>
    %22 = vector.shape_cast %21 : vector<1x512x128xbf16> to vector<512x128xbf16>
    %23 = vector.shape_cast %20 : vector<512x128xbf16> to vector<1x512x128xbf16>
    tpu.vector_store %arg12[%c0_17, %c0_18, %c0_19], %23 {strides = array<i32>} : memref<1x512x128xbf16, #tpu.memory_space<vmem>>, vector<1x512x128xbf16>,
    %c0_20 = arith.constant 0 : index
    %c0_21 = arith.constant 0 : index
    %c0_22 = arith.constant 0 : index
    %24 = vector.load %arg4[%c0_20, %c0_21, %c0_22] : memref<1x512x128xf32, #tpu.memory_space<vmem>>, vector<1x512x128xf32>
    %25 = vector.shape_cast %24 : vector<1x512x128xf32> to vector<512x128xf32>
    %26 = arith.truncf %25 : vector<512x128xf32> to vector<512x128xbf16>
    %c0_23 = arith.constant 0 : index
    %c0_24 = arith.constant 0 : index
    %27 = vector.load %arg9[%c0_23, %c0_24] : memref<128x128xbf16, #tpu.memory_space<vmem>>, vector<128x128xbf16>
    %cst_25 = arith.constant dense<0.000000e+00> : vector<512x128xf32>
    %28 = tpu.matmul %26, %27, %cst_25 {dimension_numbers = #tpu.dot_dimension_numbers<[1], [0], [0], [1], [0, 0, 1, 1], [], []>} : vector<512x128xbf16>, vector<128x128xbf16>, vector<512x128xf32> -> vector<512x128xf32>
    %c0_26 = arith.constant 0 : index
    %c0_27 = arith.constant 0 : index
    %29 = vector.load %arg10[%c0_26, %c0_27] : memref<1x128xf32, #tpu.memory_space<vmem>>, vector<1x128xf32>
    %30 = vector.broadcast %29 : vector<1x128xf32> to vector<512x128xf32>
    %31 = arith.addf %28, %30 : vector<512x128xf32>
    %32 = arith.truncf %31 : vector<512x128xf32> to vector<512x128xbf16>
    %c0_28 = arith.constant 0 : index
    %c0_29 = arith.constant 0 : index
    %c0_30 = arith.constant 0 : index
    %33 = vector.load %arg13[%c0_28, %c0_29, %c0_30] : memref<1x512x128xbf16, #tpu.memory_space<vmem>>, vector<1x512x128xbf16>
    %34 = vector.shape_cast %33 : vector<1x512x128xbf16> to vector<512x128xbf16>
    %35 = vector.shape_cast %32 : vector<512x128xbf16> to vector<1x512x128xbf16>
    tpu.vector_store %arg13[%c0_28, %c0_29, %c0_30], %35 {strides = array<i32>} : memref<1x512x128xbf16, #tpu.memory_space<vmem>>, vector<1x512x128xbf16>,
    return
  }
  func.func @transform_0(%arg0: i32, %arg1: i32) -> (i32, i32, i32) {
    %c0_i32 = arith.constant 0 : i32
    %c0_i32_0 = arith.constant 0 : i32
    return %arg0, %arg1, %c0_i32 : i32, i32, i32
  }
  func.func @transform_1(%arg0: i32, %arg1: i32) -> (i32, i32, i32) {
    %c0_i32 = arith.constant 0 : i32
    %c0_i32_0 = arith.constant 0 : i32
    return %arg0, %arg1, %c0_i32 : i32, i32, i32
  }
  func.func @transform_2(%arg0: i32, %arg1: i32) -> (i32, i32, i32) {
    %c0_i32 = arith.constant 0 : i32
    %c0_i32_0 = arith.constant 0 : i32
    return %arg0, %arg1, %c0_i32 : i32, i32, i32
  }
  func.func @transform_3(%arg0: i32, %arg1: i32) -> (i32, i32) {
    %c0_i32 = arith.constant 0 : i32
    %c0_i32_0 = arith.constant 0 : i32
    %c0_i32_1 = arith.constant 0 : i32
    return %c0_i32, %c0_i32_0 : i32, i32
  }
  func.func @transform_4(%arg0: i32, %arg1: i32) -> (i32, i32) {
    %c0_i32 = arith.constant 0 : i32
    %c0_i32_0 = arith.constant 0 : i32
    %c0_i32_1 = arith.constant 0 : i32
    return %c0_i32, %c0_i32_0 : i32, i32
  }
  func.func @transform_5(%arg0: i32, %arg1: i32) -> (i32, i32) {
    %c0_i32 = arith.constant 0 : i32
    %c0_i32_0 = arith.constant 0 : i32
    %c0_i32_1 = arith.constant 0 : i32
    return %c0_i32, %c0_i32_0 : i32, i32
  }
  func.func @transform_6(%arg0: i32, %arg1: i32) -> (i32, i32) {
    %c0_i32 = arith.constant 0 : i32
    %c0_i32_0 = arith.constant 0 : i32
    %c0_i32_1 = arith.constant 0 : i32
    return %c0_i32, %c0_i32_0 : i32, i32
  }
  func.func @transform_7(%arg0: i32, %arg1: i32) -> (i32, i32) {
    %c0_i32 = arith.constant 0 : i32
    %c0_i32_0 = arith.constant 0 : i32
    %c0_i32_1 = arith.constant 0 : i32
    return %c0_i32, %c0_i32_0 : i32, i32
  }
  func.func @transform_8(%arg0: i32, %arg1: i32) -> (i32, i32) {
    %c0_i32 = arith.constant 0 : i32
    %c0_i32_0 = arith.constant 0 : i32
    %c0_i32_1 = arith.constant 0 : i32
    return %c0_i32, %c0_i32_0 : i32, i32
  }
  func.func @transform_9(%arg0: i32, %arg1: i32) -> (i32, i32, i32) {
    %c0_i32 = arith.constant 0 : i32
    %c0_i32_0 = arith.constant 0 : i32
    return %arg0, %arg1, %c0_i32 : i32, i32, i32
  }
  func.func @transform_10(%arg0: i32, %arg1: i32) -> (i32, i32, i32) {
    %c0_i32 = arith.constant 0 : i32
    %c0_i32_0 = arith.constant 0 : i32
    return %arg0, %arg1, %c0_i32 : i32, i32, i32
  }
  func.func @transform_11(%arg0: i32, %arg1: i32) -> (i32, i32, i32) {
    %c0_i32 = arith.constant 0 : i32
    %c0_i32_0 = arith.constant 0 : i32
    return %arg0, %arg1, %c0_i32 : i32, i32, i32
  }
}

</mosaic_0001>

<bundles_post_ra>
// kernel: tpu_custom_call.1
= control target key start
LH: loop header
LB: loop body
LE: loop exit
PB: predicated region body
PF: predicated region fallthrough
CT: control target
= control target key end

     0   :  { %s6131_s0 = inlined_call_operand.hbm [shape: f32[2,512,128], index: 0, kind: input, shape index: {}]   ;;  %s6132_s1 = inlined_call_operand.hbm [shape: f32[2,512,128], index: 1, kind: input, shape index: {}]   ;;  %s6133_s2 = inlined_call_operand.hbm [shape: f32[2,512,128], index: 2, kind: input, shape index: {}]   ;;  %s6134_s3 = inlined_call_operand.hbm [shape: bf16[128,128], index: 3, kind: input, shape index: {}]   ;;  %s6135_s4 = inlined_call_operand.vmem [shape: f32[1,128], index: 4, kind: input, shape index: {}]   ;;  %s6136_s5 = inlined_call_operand.hbm [shape: bf16[128,128], index: 5, kind: input, shape index: {}]   ;;  %s6137_s6 = inlined_call_operand.vmem [shape: f32[1,128], index: 6, kind: input, shape index: {}]   ;;  %s6138_s7 = inlined_call_operand.hbm [shape: bf16[128,128], index: 7, kind: input, shape index: {}]   ;;  %s6139_s8 = inlined_call_operand.vmem [shape: f32[1,128], index: 8, kind: input, shape index: {}]   ;;  %s6140_s9 = inlined_call_operand.hbm [shape: bf16[2,512,128], index: 9, kind: output, shape index: {0}]   ;;  %s6141_s10 = inlined_call_operand.hbm [shape: bf16[2,512,128], index: 10, kind: output, shape index: {1}]   ;;  %s6142_s11 = inlined_call_operand.hbm [shape: bf16[2,512,128], index: 11, kind: output, shape index: {2}]  }
   0x1   :  { %6176 = sst [smem:[#allocation31_spill]] %s6132_s1 }
   0x2   :  { %6177 = sst [smem:[#allocation32_spill]] %s6134_s3 }
   0x3   :  { %6178 = sst [smem:[#allocation33_spill]] %s6137_s6 }
   0x4   :  { %6179 = sst [smem:[#allocation34_spill]] %s6139_s8 }
   0x5   :  { %6180 = sst [smem:[#allocation35_spill]] %s6140_s9 }
   0x6   :  { %6181 = sst [smem:[#allocation36_spill]] %s6141_s10 }
   0x7   :  { %6182 = sst [smem:[#allocation37_spill]] %s6142_s11 }
   0x8   :  { %17 = vsyncpa [#allocation3], 0 }
   0x9   :  { %19 = vsyncpa [#allocation3 + $0x1], 0 }
   0xa   :  { %20 = vsyncpa [#allocation6], 0 }
   0xb   :  { %22 = vsyncpa [#allocation6 + $0x1], 0 }
   0xc   :  { %23 = vsyncpa [#allocation9], 0 }
   0xd   :  { %24 = vsyncpa [#allocation12], 0 }
   0xe   :  { %25 = vsyncpa [#allocation4], 0 }
   0xf   :  { %27 = vsyncpa [#allocation4 + $0x1], 0 }
  0x10   :  { %28 = vsyncpa [#allocation15], 0 }
  0x11   :  { %30 = vsyncpa [#allocation15 + $0x1], 0  ;;  %s5154_s17 = smov 0   ;;  %s5156_s18 = smov 0  }
  0x12   :  { %s5158_s19 = smov 0   ;;  %s5160_s20 = smov 0  }
  0x13   :  { %s5162_s21 = smov 0   ;;  %s5164_s22 = smov 0  }
  0x14 LB: > { %6183 = sst [smem:[#allocation23_spill]] %s5057_s17  ;;  %s5185_s23 = sadd.s32 4294967295, %s5077_s22   ;;  %s5077_s22 = sphi %s5164_s22, %s36_s22   ;;  %s5073_s21 = sphi %s5162_s21, %s6235_s21   ;;  %s5069_s20 = sphi %s5160_s20, %s6234_s20   ;;  %s5065_s19 = sphi %s5158_s19, %s6238_s19   ;;  %s5061_s18 = sphi %s5156_s18, %s6237_s18   ;;  %s5057_s17 = sphi %s5154_s17, %s6236_s17  }
  0x15   : > { %6184 = sst [smem:[#allocation24_spill]] %s5069_s20  ;;  %s6143_s24 = sadd.s32 4294967294, %s5077_s22  }
  0x16   : > { %6185 = sst [smem:[#allocation25_spill]] %s5073_s21  ;;  %p64_p0 = scmp.ne.s32.totalorder %s5065_s19, %s5061_s18 }
  0x17   : > { %6186 = sst [smem:[#allocation26_spill]] %s5077_s22  ;;  %p65_p1 = scmp.eq.s32.totalorder %s5077_s22, 0 }
  0x18   : > { %p70_p2 = scmp.ne.s32.totalorder %s5061_s18, %s5057_s17  ;;  %p6149_p3 = scmp.eq.s32.totalorder %s5185_s23, 0 }
  0x19   : > { %p5194_p4 = por %p65_p1, %p64_p0  ;;  %p278_p5 = scmp.eq.s32.totalorder %s5185_s23, 1 }
  0x1a   : > { %p5201_p6 = por %p6149_p3, %p70_p2  ;;  %p284_p7 = scmp.eq.s32.totalorder %s6143_s24, 1 }
  0x1b   : > { %p5207_p8 = por %p278_p5, %p64_p0  ;;  %p3205_p9 = scmp.ge.s32.totalorder %s5077_s22, 1 }
  0x1c   : > { %s6188_s26 = scalar_select %p5201_p6, 1, 0 }
  0x1d   : > { %s6189_s27 = scalar_select %p5207_p8, 1, 0 }
  0x1e   : > { %p5212_p10 = por %p284_p7, %p70_p2  ;;  %p347_p11 = scmp.lt.s32.totalorder %s5077_s22, 3 }
  0x1f   : > { %6190 = sst [smem:[#allocation27_spill]] %s6189_s27  ;;  %s5079_s30 = smov [#allocation8]  }
  0x20   : > { %s6191_s28 = scalar_select %p5212_p10, 1, 0 }
  0x21   : > { %p5217_p12 = pnand %p3205_p9, %p347_p11  ;;  %s359_s12 = sshll.u32 %s5079_s30, 4  ;;  %s5221_s12 = int_to_ptr.vmem [resolvable:$true] %s359_s12 }
  0x22   : > { %6192 = sst [smem:[#allocation28_spill]] %s6191_s28  ;;  %s48_s14 = sadd.s32 1, %s5073_s21 }
  0x23   : > { %s6193_s29 = scalar_select %p5217_p12, 1, 0 }
  0x24   : > { %p4630_p13 = pneg %p5217_p12  ;;  %p5234_p2 = scmp.ge.s32.totalorder %s48_s14, 2 }
  0x25   : > { %s6196_s3 = sld [smem:[#allocation32_spill]] }
  0x26   : > { %p5228_p1 = pnand %p4630_p13, %p6149_p3 }
  0x28   : > { %s6194_s13 = scalar_select %p5228_p1, 1, 0 }
  0x29   : > { %p5246_p7 = pneg %p5228_p1 }
  0x2b   : > { %s4749_s30 = scalar_lea.hbm %s6196_s3, 1024 }
  0x2c   : > { %p4750_p5 = scmp.ne.s32.totalorder %s6196_s3, %s4749_s30  ;;  %p4756_p13 = scmp.lt.u32.totalorder %s4749_s30, %s6196_s3 }
  0x2d   : > { %s6197_s10 = scalar_select %p5246_p7, 1, 0 }
  0x2e   : > { %p4752_p9 = pnand %p5246_p7, %p4750_p5 }
  0x30   : > { %p4753_p11 = pneg %p4752_p9 }
  0x32   : > { %p4758_p0 = pnand %p4756_p13, %p4753_p11 }
  0x34   : > { %4761 = shalt.err (!%p4758_p0)
}
  0x35   : > { %s4762_s11 = scalar_lea.vmem %s5221_s12, 1024  ;;  %p4770_p6 = scmp.lt.s32.totalorder %s5221_s12, %s5221_s12 }
  0x36   : > { %p4763_p3 = scmp.ne.s32.totalorder %s5221_s12, %s4762_s11  ;;  %p4771_p12 = scmp.lt.s32.totalorder %s4762_s11, %s4762_s11 }
  0x38   : > { %p4765_p10 = pnand %p4763_p3, %p5246_p7  ;;  %p4772_p5 = por %p4771_p12, %p4770_p6 }
  0x3a   : > { %p4766_p8 = pneg %p4765_p10 }
  0x3c   : > { %p4773_p9 = pnand %p4772_p5, %p4766_p8 }
  0x3e   : > { %4776 = shalt.err (!%p4773_p9)
}
  0x3f   : > { %s6155_s17 = smov 64   ;;  %s6158_s9 = smov 4  }
  0x40   : > { %4633 = dma.hbm_to_vmem [thread:$0]  (!%p5228_p1), %s6196_s3, 1024, %s5221_s12, [#allocation9], %s6155_s17, %s6155_s17, %s6158_s9  }
  0x41   : > { %s6240_s14 = smov (%p5234_p2, %s48_s14), 0  ;;  %p4663_p3 = scmp.lt.s32.totalorder %s5077_s22, 2 }
  0x42   : > { %6198 = sst [smem:[#allocation29_spill]] %s6240_s14  ;;  %s6157_s15 = sand.u32 1, %s5065_s19  }
  0x43   : > { %s52_s30 = ssub.s32 %s5073_s21, %s6240_s14  ;;  %s5280_s11 = sshll.u32 %s6157_s15, 9 }
  0x44   : > { %p55_p6 = scmp.eq.s32.totalorder %s52_s30, 0  ;;  %s5283_s27 = sshll.u32 %s5073_s21, 13 }
  0x45   : > { %p5287_p8 = pnand %p4663_p3, %p5194_p4  ;;  %s6200_s12 = sadd.s32 1, %s5065_s19 }
  0x46   : > { %s5294_s16 = scalar_select %p55_p6, %s5065_s19, %s6200_s12  }
  0x47   : > { %s6199_s6 = scalar_select %p5287_p8, 1, 0 }
  0x48   : > { %6201 = sst [smem:[#allocation30_spill]] %s5294_s16  ;;  %s431_s24 = sand.u32 1, %s5077_s22  }
  0x49   : > { %s6202_s1 = sld [smem:[#allocation31_spill]]  ;;  %s435_s25 = scalar_lea.vmem [#allocation5], %s5280_s11 }
  0x4a   : > { %s444_s30 = sshll.u32 %s435_s25, 4  ;;  %s5082_s9 = smov [#allocation10]   ;;  %s5304_s30 = int_to_ptr.vmem [resolvable:$true] %s444_s30 }
  0x4b   : > { %s5306_s3 = sshll.u32 %s5082_s9, 4  ;;  %s5308_s14 = scalar_lea.sflag [#allocation6], %s431_s24  ;;  %s376_s3 = int_to_ptr.vmem [resolvable:$true] %s5306_s3 }
  0x4c   : > { %p5314_p10 = pneg %p5287_p8 }
  0x4e   : > { %s6203_s17 = scalar_select %p5314_p10, 1, 0 }
  0x4f   : > { %s5301_s15 = scalar_lea.hbm %s6202_s1, %s5283_s27  ;;  %s4782_s21 = scalar_lea.hbm %s6202_s1, 16384 }
  0x50   : > { %s4777_s12 = scalar_lea.hbm %s5301_s15, 8192  ;;  %p4783_p2 = scmp.lt.u32.totalorder %s5301_s15, %s6202_s1 }
  0x51   : > { %p4778_p4 = scmp.ne.s32.totalorder %s5301_s15, %s4777_s12  ;;  %p4784_p11 = scmp.lt.u32.totalorder %s4782_s21, %s4777_s12 }
  0x52   : > { %p4786_p5 = scmp.lt.u32.totalorder %s4777_s12, %s5301_s15 }
  0x53   : > { %p4780_p12 = pnand %p5314_p10, %p4778_p4  ;;  %p4785_p13 = por %p4784_p11, %p4783_p2 }
  0x55   : > { %p4781_p0 = pneg %p4780_p12  ;;  %p4787_p9 = por %p4786_p5, %p4785_p13 }
  0x57   : > { %p4788_p3 = pnand %p4787_p9, %p4781_p0 }
  0x59   : > { %4791 = shalt.err (!%p4788_p3)
}
  0x5a   : > { %s4792_s24 = scalar_lea.vmem %s5304_s30, 8192  ;;  %s5083_s28 = smov [#allocation5]  }
  0x5b   : > { %p4793_p6 = scmp.ne.s32.totalorder %s5304_s30, %s4792_s24  ;;  %s4797_s25 = sshll.u32 %s5083_s28, 4  ;;  %s4798_s25 = int_to_ptr.vmem [resolvable:$false] %s4797_s25 }
  0x5c   : > { %s4799_s16 = scalar_lea.vmem %s4798_s25, 16384  ;;  %p4800_p1 = scmp.lt.s32.totalorder %s5304_s30, %s4798_s25 }
  0x5d   : > { %p4795_p4 = pnand %p4793_p6, %p5314_p10  ;;  %p4801_p7 = scmp.lt.s32.totalorder %s4799_s16, %s4792_s24 }
  0x5f   : > { %p4796_p12 = pneg %p4795_p4  ;;  %p4802_p2 = por %p4801_p7, %p4800_p1 }
  0x61   : > { %p4803_p11 = pnand %p4802_p2, %p4796_p12 }
  0x63   : > { %4806 = shalt.err (!%p4803_p11)
}
  0x64   : > { %s6170_s21 = smov 128   ;;  %s6172_s12 = smov 8  }
  0x65   : > { %4646 = dma.hbm_to_vmem [thread:$0]  (!%p5287_p8), %s5301_s15, 8192, %s5304_s30, %s5308_s14, %s6170_s21, %s6170_s21, %s6172_s12  }
  0x66   : > { %s4807_s24 = scalar_lea.hbm %s6136_s5, 1024  ;;  %p6204_p7 = scmp.ne.s32.totalorder %s6197_s10, 0 }
  0x67   : > { %p4808_p1 = scmp.ne.s32.totalorder %s6136_s5, %s4807_s24  ;;  %p4814_p5 = scmp.lt.u32.totalorder %s4807_s24, %s6136_s5 }
  0x69   : > { %p4810_p0 = pnand %p4808_p1, %p6204_p7 }
  0x6b   : > { %p4811_p13 = pneg %p4810_p0 }
  0x6d   : > { %p4816_p9 = pnand %p4814_p5, %p4811_p13 }
  0x6f   : > { %4819 = shalt.err (!%p4816_p9)
}
  0x70   : > { %s4820_s8 = scalar_lea.vmem %s376_s3, 1024  ;;  %p4828_p12 = scmp.lt.s32.totalorder %s376_s3, %s376_s3 }
  0x71   : > { %p4821_p3 = scmp.ne.s32.totalorder %s376_s3, %s4820_s8  ;;  %p4829_p2 = scmp.lt.s32.totalorder %s4820_s8, %s4820_s8 }
  0x73   : > { %p4823_p6 = pnand %p4821_p3, %p6204_p7  ;;  %p4830_p11 = por %p4829_p2, %p4828_p12 }
  0x75   : > { %p4824_p4 = pneg %p4823_p6 }
  0x77   : > { %p4831_p8 = pnand %p4830_p11, %p4824_p4 }
  0x79   : > { %4834 = shalt.err (!%p4831_p8)
}
  0x7a   : > { %p6205_p1 = scmp.ne.s32.totalorder %s6194_s13, 0  ;;  %s6206_s15 = smov 4  }
  0x7b   : > { %s6207_s30 = smov 64   ;;  %s5086_s9 = smov [#allocation11]  }
  0x7c   : > { %4636 = dma.hbm_to_vmem [thread:$0]  (!%p6205_p1), %s6136_s5, 1024, %s376_s3, [#allocation9], %s6207_s30, %s6207_s30, %s6206_s15  }
  0x7d   : > { %s391_s28 = sshll.u32 %s5086_s9, 4  ;;  %s4835_s8 = scalar_lea.hbm %s6138_s7, 1024  ;;  %s392_s28 = int_to_ptr.vmem [resolvable:$true] %s391_s28 }
  0x7e   : > { %p4836_p8 = scmp.ne.s32.totalorder %s6138_s7, %s4835_s8  ;;  %p4842_p5 = scmp.lt.u32.totalorder %s4835_s8, %s6138_s7 }
  0x80   : > { %p4838_p0 = pnand %p4836_p8, %p6204_p7 }
  0x82   : > { %p4839_p13 = pneg %p4838_p0 }
  0x84   : > { %p4844_p9 = pnand %p4842_p5, %p4839_p13 }
  0x86   : > { %4847 = shalt.err (!%p4844_p9)
}
  0x87   : > { %s4848_s3 = scalar_lea.vmem %s392_s28, 1024  ;;  %p4856_p12 = scmp.lt.s32.totalorder %s392_s28, %s392_s28 }
  0x88   : > { %p4849_p3 = scmp.ne.s32.totalorder %s392_s28, %s4848_s3  ;;  %p4857_p2 = scmp.lt.s32.totalorder %s4848_s3, %s4848_s3 }
  0x8a   : > { %p4851_p6 = pnand %p4849_p3, %p6204_p7  ;;  %p4858_p11 = por %p4857_p2, %p4856_p12 }
  0x8c   : > { %p4852_p4 = pneg %p4851_p6 }
  0x8e   : > { %p4859_p10 = pnand %p4858_p11, %p4852_p4 }
  0x90   : > { %4862 = shalt.err (!%p4859_p10)
}
  0x91   : > { %4639 = dma.hbm_to_vmem [thread:$0]  (!%p6205_p1), %s6138_s7, 1024, %s392_s28, [#allocation12], %s6207_s30, %s6207_s30, %s6206_s15  }
  0x92   : > { %s5388_s1 = scalar_lea.hbm %s6131_s0, %s5283_s27  ;;  %s412_s13 = scalar_lea.vmem [#allocation2], %s5280_s11 }
  0x93   : > { %s421_s22 = sshll.u32 %s412_s13, 4  ;;  %s6208_s9 = sand.u32 1, %s5065_s19   ;;  %s5391_s22 = int_to_ptr.vmem [resolvable:$true] %s421_s22 }
  0x94   : > { %s5395_s24 = scalar_lea.sflag [#allocation3], %s6208_s9  ;;  %s4863_s25 = scalar_lea.hbm %s5388_s1, 8192 }
  0x95   : > { %p4864_p10 = scmp.ne.s32.totalorder %s5388_s1, %s4863_s25  ;;  %p6209_p7 = scmp.ne.s32.totalorder %s6203_s17, 0 }
  0x96   : > { %s4868_s28 = scalar_lea.hbm %s6131_s0, 16384  ;;  %p4869_p0 = scmp.lt.u32.totalorder %s5388_s1, %s6131_s0 }
  0x97   : > { %p4866_p1 = pnand %p4864_p10, %p6209_p7  ;;  %p4870_p13 = scmp.lt.u32.totalorder %s4868_s28, %s4863_s25 }
  0x98   : > { %p4872_p9 = scmp.lt.u32.totalorder %s4863_s25, %s5388_s1 }
  0x99   : > { %p4867_p8 = pneg %p4866_p1  ;;  %p4871_p5 = por %p4870_p13, %p4869_p0 }
  0x9b   : > { %p4873_p3 = por %p4872_p9, %p4871_p5 }
  0x9d   : > { %p4874_p6 = pnand %p4873_p3, %p4867_p8 }
  0x9f   : > { %4877 = shalt.err (!%p4874_p6)
}
  0xa0   : > { %s4878_s3 = scalar_lea.vmem %s5391_s22, 8192  ;;  %s5087_s20 = smov [#allocation2]  }
  0xa1   : > { %p4879_p4 = scmp.ne.s32.totalorder %s5391_s22, %s4878_s3  ;;  %s4883_s21 = sshll.u32 %s5087_s20, 4  ;;  %s4884_s21 = int_to_ptr.vmem [resolvable:$false] %s4883_s21 }
  0xa2   : > { %s4885_s10 = scalar_lea.vmem %s4884_s21, 16384  ;;  %p4886_p11 = scmp.lt.s32.totalorder %s5391_s22, %s4884_s21 }
  0xa3   : > { %p4881_p12 = pnand %p4879_p4, %p6209_p7  ;;  %p4887_p10 = scmp.lt.s32.totalorder %s4885_s10, %s4878_s3 }
  0xa5   : > { %p4882_p2 = pneg %p4881_p12  ;;  %p4888_p1 = por %p4887_p10, %p4886_p11 }
  0xa7   : > { %p4889_p0 = pnand %p4888_p1, %p4882_p2 }
  0xa9   : > { %4892 = shalt.err (!%p4889_p0)
}
  0xaa   : > { %p6210_p8 = scmp.ne.s32.totalorder %s6199_s6, 0  ;;  %s6211_s12 = smov 8  }
  0xab   : > { %s6212_s13 = smov 128   ;;  %s5426_s15 = scalar_lea.hbm %s6133_s2, %s5283_s27 }
  0xac   : > { %4643 = dma.hbm_to_vmem [thread:$0]  (!%p6210_p8), %s5388_s1, 8192, %s5391_s22, %s5395_s24, %s6212_s13, %s6212_s13, %s6211_s12  }
  0xad   : > { %s458_s30 = scalar_lea.vmem [#allocation7], %s5280_s11  ;;  %s4893_s8 = scalar_lea.hbm %s5426_s15, 8192 }
  0xae   : > { %s467_s28 = sshll.u32 %s458_s30, 4  ;;  %p4894_p13 = scmp.ne.s32.totalorder %s5426_s15, %s4893_s8  ;;  %s5429_s28 = int_to_ptr.vmem [resolvable:$true] %s467_s28 }
  0xaf   : > { %s4898_s22 = scalar_lea.hbm %s6133_s2, 16384  ;;  %p4899_p3 = scmp.lt.u32.totalorder %s5426_s15, %s6133_s2 }
  0xb0   : > { %p4896_p5 = pnand %p4894_p13, %p6209_p7  ;;  %p4900_p6 = scmp.lt.u32.totalorder %s4898_s22, %s4893_s8 }
  0xb1   : > { %p4902_p12 = scmp.lt.u32.totalorder %s4893_s8, %s5426_s15 }
  0xb2   : > { %p4897_p9 = pneg %p4896_p5  ;;  %p4901_p4 = por %p4900_p6, %p4899_p3 }
  0xb4   : > { %p4903_p2 = por %p4902_p12, %p4901_p4 }
  0xb6   : > { %p4904_p11 = pnand %p4903_p2, %p4897_p9 }
  0xb8   : > { %4907 = shalt.err (!%p4904_p11)
}
  0xb9   : > { %s4908_s11 = scalar_lea.vmem %s5429_s28, 8192  ;;  %s5088_s3 = smov [#allocation7]  }
  0xba   : > { %p4909_p10 = scmp.ne.s32.totalorder %s5429_s28, %s4908_s11  ;;  %s4913_s20 = sshll.u32 %s5088_s3, 4  ;;  %s4914_s20 = int_to_ptr.vmem [resolvable:$false] %s4913_s20 }
  0xbb   : > { %s4915_s21 = scalar_lea.vmem %s4914_s20, 16384  ;;  %p4916_p13 = scmp.lt.s32.totalorder %s5429_s28, %s4914_s20 }
  0xbc   : > { %p4911_p1 = pnand %p4909_p10, %p6209_p7  ;;  %p4917_p5 = scmp.lt.s32.totalorder %s4915_s21, %s4908_s11 }
  0xbe   : > { %p4912_p0 = pneg %p4911_p1  ;;  %p4918_p3 = por %p4917_p5, %p4916_p13 }
  0xc0   : > { %p4919_p6 = pnand %p4918_p3, %p4912_p0 }
  0xc2   : > { %4922 = shalt.err (!%p4919_p6)
}
  0xc3   : > { %4649 = dma.hbm_to_vmem [thread:$0]  (!%p6210_p8), %s5426_s15, 8192, %s5429_s28, %s5308_s14, %s6212_s13, %s6212_s13, %s6211_s12  }
  0xc4   : > { %p6213_p7 = scmp.ne.s32.totalorder %s6193_s29, 0 }
  0xc5   : > { %s5459_s17 = sand.u32 (!%p6213_p7), 1, %s5061_s18   ;;  %p6214_p9 = scmp.ne.s32.totalorder (!%p6213_p7), %s6188_s26, 0 }
  0xc6   : > { %479 = sbr.rel (%p6213_p7) target bundleno = 688 (0x2b0), region = 56  ;;  %s3220_s10 = sshll.u32 (!%p6213_p7), %s5459_s17, 9 }
  0xc7   : > { %s482_s9 = scalar_lea.sflag (!%p6213_p7), [#allocation3], %s5459_s17  ;;  %s5463_s25 = scalar_lea.vmem (!%p6213_p7), [#allocation2], %s3220_s10 }
  0xcd   : > { %5032 = dma.done.wait (%p6214_p9), %s482_s9, 8192  }
  0xce   : > { %5034 = vsyncadd (%p6214_p9), %s482_s9, 4294959104  ;;  %s490_s6 = sand.u32 1, %s5185_s23   ;;  %s5472_s14 = scalar_lea.vmem [#allocation5], %s3220_s10 }
  0xcf   : > { %s491_s29 = scalar_lea.sflag [#allocation6], %s490_s6 }
  0xd0   : > { %5036 = dma.done.wait (%p6214_p9), %s491_s29, 16384  }
  0xd1   : > { %5038 = vsyncadd (%p6214_p9), %s491_s29, 4294950912  ;;  %s5478_s12 = scalar_lea.vmem [#allocation7], %s3220_s10  ;;  %p6215_p8 = scmp.eq.s32.totalorder %s5185_s23, 0 }
  0xd3   : > { %5040 = dma.done.wait (%p6215_p8), [#allocation9], 2048   ;;  %p6216_p4 = pmov %p6215_p8 }
  0xd5   : > { %5042 = vsyncadd (%p6216_p4), [#allocation9], 4294965248  ;;  %p6217_p12 = pmov %p6216_p4 }
  0xd6   : > { %p6218_p2 = pmov %p6216_p4 }
  0xd7   : > { %5044 = dma.done.wait (%p6217_p12), [#allocation12], 1024  }
  0xd8   : > { %5046 = vsyncadd (%p6218_p2), [#allocation12], 4294966272  ;;  %v4725_v0 = vld [vmem:[#allocation8] sm:$0xff]   ;;  %v4726_v1 = vld [vmem:[#allocation8 + $0x8] sm:$0xff]   ;;  %s5687_s15 = sshll.u32 %s5459_s17, 8  ;;  %s6219_s28 = sld [smem:[#allocation24_spill]] }
  0xd9   : > { %4350 = vmatprep.subr.bf16.mxu0 %v4725_v0  ;;  %4590 = vmatprep.subr.bf16.mxu1 %v4725_v0  ;;  %v4727_v2 = vld [vmem:[#allocation8 + $0x10] sm:$0xff]   ;;  %v4728_v3 = vld [vmem:[#allocation8 + $0x18] sm:$0xff]   ;;  %v581_v4 = vld [vmem:[%s5463_s25] sm:$0xff]  ;;  %s5697_s30 = scalar_lea.vmem [#allocation13], %s5687_s15  ;;  %s6220_s1 = sld [smem:[#allocation34_spill]] }
  0xda   : > { %4351 = vmatpush3.bf16.msra.mxu0 %v4725_v0  ;;  %4598 = vmatpush3.bf16.msra.mxu1 %v4725_v0  ;;  %v582_v5 = vld [vmem:[%s5463_s25 + $0x8] sm:$0xff]  ;;  %v613_v6 = vld [vmem:[%s5463_s25 + $0x100] sm:$0xff]  ;;  %v4731_v12 = vld [vmem:[#allocation8 + $0x30] sm:$0xff]   ;;  %s6221_s27 = sld [smem:[#allocation33_spill]]  ;;  %s6222_s3 = sld [smem:[#allocation27_spill]] }
  0xdb   : > { %4352 = vmatprep.subr.bf16.mxu0 %v4726_v1  ;;  %4591 = vmatprep.subr.bf16.mxu1 %v4726_v1  ;;  %v645_v7 = vpack.c.bf16 %v582_v5, %v581_v4  ;;  %v614_v8 = vld [vmem:[%s5463_s25 + $0x108] sm:$0xff]  ;;  %v4729_v10 = vld [vmem:[#allocation8 + $0x20] sm:$0xff]   ;;  %v4732_v13 = vld [vmem:[#allocation8 + $0x38] sm:$0xff]   ;;  %s6223_s10 = sld [smem:[#allocation35_spill]]  ;;  %s2910_s29 = scalar_lea.sflag [#allocation4], %s5459_s17 }
  0xdc   : > { %v661_v9 = vpack.c.bf16 %v614_v8, %v613_v6  ;;  %v4730_v11 = vld [vmem:[#allocation8 + $0x28] sm:$0xff]   ;;  %v583_v14 = vld [vmem:[%s5463_s25 + $0x10] sm:$0xff]  ;;  %v584_v15 = vld [vmem:[%s5463_s25 + $0x18] sm:$0xff] }
  0xdd   : > { %4366 = vmatprep.mubr.bf16.mxu0 %v645_v7  ;;  %v615_v16 = vld [vmem:[%s5463_s25 + $0x110] sm:$0xff]  ;;  %v616_v17 = vld [vmem:[%s5463_s25 + $0x118] sm:$0xff]  ;;  %v4733_v18 = vld [vmem:[#allocation10] sm:$0xff]   ;;  %v646_v24 = vpack.c.bf16 %v584_v15, %v583_v14 }
  0xde   : > { %4353 = vmatpush3.bf16.msra.mxu0 %v4726_v1  ;;  %4599 = vmatpush3.bf16.msra.mxu1 %v4726_v1  ;;  %v4734_v19 = vld [vmem:[#allocation11] sm:$0xff]   ;;  %v586_v21 = vld [vmem:[%s5463_s25 + $0x28] sm:$0xff]  ;;  %v662_v25 = vpack.c.bf16 %v616_v17, %v615_v16  ;;  %v587_v28 = vld [vmem:[%s5463_s25 + $0x30] sm:$0xff]  ;;  %s5798_s11 = sshll.u32 %s6219_s28, 12 }
  0xdf   : > { %4354 = vmatprep.subr.bf16.mxu0 %v4727_v2  ;;  %4592 = vmatprep.subr.bf16.mxu1 %v4727_v2  ;;  %v585_v20 = vld [vmem:[%s5463_s25 + $0x20] sm:$0xff]  ;;  %v618_v23 = vld [vmem:[%s5463_s25 + $0x128] sm:$0xff]  ;;  %v588_v29 = vld [vmem:[%s5463_s25 + $0x38] sm:$0xff] }
  0xe0   : > { %4398 = vmatprep.mubr.bf16.mxu1 %v661_v9  ;;  %v617_v22 = vld [vmem:[%s5463_s25 + $0x120] sm:$0xff]  ;;  %v647_v26 = vpack.c.bf16 %v586_v21, %v585_v20  ;;  %v619_v30 = vld [vmem:[%s5463_s25 + $0x130] sm:$0xff]  ;;  %v620_v31 = vld [vmem:[%s5463_s25 + $0x138] sm:$0xff]  ;;  %v648_v40 = vpack.c.bf16 %v588_v29, %v587_v28  ;;  %p6224_p10 = scmp.ne.s32.totalorder %s6222_s3, 0 }
  0xe1   : > { %v663_v27 = vpack.c.bf16 %v618_v23, %v617_v22  ;;  %v4735_v32 = vld [vmem:[#allocation10 + $0x8] sm:$0xff]   ;;  %v589_v34 = vld [vmem:[%s5463_s25 + $0x40] sm:$0xff]  ;;  %v4737_v38 = vld [vmem:[#allocation10 + $0x10] sm:$0xff]   ;;  %v664_v41 = vpack.c.bf16 %v620_v31, %v619_v30  ;;  %s5808_s9 = scalar_lea.hbm %s6223_s10, %s5798_s11 }
  0xe2   : > { %4355 = vmatpush3.bf16.msra.mxu0 %v4727_v2  ;;  %4600 = vmatpush3.bf16.msra.mxu1 %v4727_v2  ;;  %v4736_v33 = vld [vmem:[#allocation11 + $0x8] sm:$0xff]   ;;  %v621_v36 = vld [vmem:[%s5463_s25 + $0x140] sm:$0xff]  ;;  %v4738_v39 = vld [vmem:[#allocation11 + $0x10] sm:$0xff]  }
  0xe3   : > { %4356 = vmatprep.subr.bf16.mxu0 %v4728_v3  ;;  %4593 = vmatprep.subr.bf16.mxu1 %v4728_v3  ;;  %v590_v35 = vld [vmem:[%s5463_s25 + $0x48] sm:$0xff]  ;;  %v591_v44 = vld [vmem:[%s5463_s25 + $0x50] sm:$0xff]  ;;  %v592_v45 = vld [vmem:[%s5463_s25 + $0x58] sm:$0xff] }
  0xe4   : > { %v622_v37 = vld [vmem:[%s5463_s25 + $0x148] sm:$0xff]  ;;  %v649_v42 = vpack.c.bf16 %v590_v35, %v589_v34  ;;  %v623_v46 = vld [vmem:[%s5463_s25 + $0x150] sm:$0xff]  ;;  %v4739_v47 = vld [vmem:[#allocation10 + $0x18] sm:$0xff]   ;;  %v650_v56 = vpack.c.bf16 %v592_v45, %v591_v44 }
  0xe5   : > { %v665_v43 = vpack.c.bf16 %v622_v37, %v621_v36  ;;  %v4740_v48 = vld [vmem:[#allocation11 + $0x18] sm:$0xff]   ;;  %v593_v50 = vld [vmem:[%s5463_s25 + $0x60] sm:$0xff]  ;;  %v594_v51 = vld [vmem:[%s5463_s25 + $0x68] sm:$0xff] }
  0xe6   : > { %4357 = vmatpush3.bf16.msra.mxu0 %v4728_v3  ;;  %4601 = vmatpush3.bf16.msra.mxu1 %v4728_v3  ;;  %v624_v49 = vld [vmem:[%s5463_s25 + $0x158] sm:$0xff]  ;;  %v625_v52 = vld [vmem:[%s5463_s25 + $0x160] sm:$0xff]  ;;  %v626_v53 = vld [vmem:[%s5463_s25 + $0x168] sm:$0xff]  ;;  %v651_v58 = vpack.c.bf16 %v594_v51, %v593_v50 }
  0xe7   : > { %4358 = vmatprep.subr.bf16.mxu0 %v4729_v10  ;;  %4594 = vmatprep.subr.bf16.mxu1 %v4729_v10  ;;  %v4741_v54 = vld [vmem:[#allocation10 + $0x20] sm:$0xff]   ;;  %v666_v57 = vpack.c.bf16 %v624_v49, %v623_v46  ;;  %v667_v59 = vpack.c.bf16 %v626_v53, %v625_v52  ;;  %v4743_v60 = vld [vmem:[#allocation10 + $0x28] sm:$0xff]   ;;  %v595_v62 = vld [vmem:[%s5463_s25 + $0x70] sm:$0xff] }
  0xe8   : > { %v4742_v55 = vld [vmem:[#allocation11 + $0x20] sm:$0xff]   ;;  %v4744_v61 = vld [vmem:[#allocation11 + $0x28] sm:$0xff]   ;;  %v596_v63 = vld [vmem:[%s5463_s25 + $0x78] sm:$0xff] }
  0xe9   : > { %v627_v0 = vld [vmem:[%s5463_s25 + $0x170] sm:$0xff]  ;;  %v628_v1 = vld [vmem:[%s5463_s25 + $0x178] sm:$0xff]  ;;  %v597_v2 = vld [vmem:[%s5463_s25 + $0x80] sm:$0xff]  ;;  %v652_v8 = vpack.c.bf16 %v596_v63, %v595_v62 }
  0xea   : > { %4359 = vmatpush3.bf16.msra.mxu0 %v4729_v10  ;;  %4602 = vmatpush3.bf16.msra.mxu1 %v4729_v10  ;;  %v598_v3 = vld [vmem:[%s5463_s25 + $0x88] sm:$0xff]  ;;  %v629_v4 = vld [vmem:[%s5463_s25 + $0x180] sm:$0xff]  ;;  %v4745_v6 = vld [vmem:[#allocation10 + $0x30] sm:$0xff]   ;;  %v668_v9 = vpack.c.bf16 %v628_v1, %v627_v0 }
  0xeb   : > { %4360 = vmatprep.subr.bf16.mxu0 %v4730_v11  ;;  %4595 = vmatprep.subr.bf16.mxu1 %v4730_v11  ;;  %v630_v5 = vld [vmem:[%s5463_s25 + $0x188] sm:$0xff]  ;;  %v4746_v7 = vld [vmem:[#allocation11 + $0x30] sm:$0xff]   ;;  %v653_v10 = vpack.c.bf16 %v598_v3, %v597_v2  ;;  %v600_v15 = vld [vmem:[%s5463_s25 + $0x98] sm:$0xff] }
  0xec   : > { %v599_v14 = vld [vmem:[%s5463_s25 + $0x90] sm:$0xff]  ;;  %v632_v17 = vld [vmem:[%s5463_s25 + $0x198] sm:$0xff]  ;;  %v633_v20 = vld [vmem:[%s5463_s25 + $0x1a0] sm:$0xff] }
  0xed   : > { %v631_v16 = vld [vmem:[%s5463_s25 + $0x190] sm:$0xff]  ;;  %v634_v21 = vld [vmem:[%s5463_s25 + $0x1a8] sm:$0xff]  ;;  %v654_v22 = vpack.c.bf16 %v600_v15, %v599_v14  ;;  %v636_v29 = vld [vmem:[%s5463_s25 + $0x1b8] sm:$0xff] }
  0xee   : > { %4361 = vmatpush3.bf16.msra.mxu0 %v4730_v11  ;;  %4603 = vmatpush3.bf16.msra.mxu1 %v4730_v11  ;;  %v669_v11 = vpack.c.bf16 %v630_v5, %v629_v4  ;;  %v670_v23 = vpack.c.bf16 %v632_v17, %v631_v16  ;;  %v635_v28 = vld [vmem:[%s5463_s25 + $0x1b0] sm:$0xff]  ;;  %v605_v30 = vld [vmem:[%s5463_s25 + $0xc0] sm:$0xff]  ;;  %v606_v31 = vld [vmem:[%s5463_s25 + $0xc8] sm:$0xff] }
  0xef   : > { %4362 = vmatprep.subr.bf16.mxu0 %v4731_v12  ;;  %4596 = vmatprep.subr.bf16.mxu1 %v4731_v12  ;;  %v672_v35 = vpack.c.bf16 %v636_v29, %v635_v28  ;;  %v657_v36 = vpack.c.bf16 %v606_v31, %v605_v30  ;;  %v641_v44 = vld [vmem:[%s5463_s25 + $0x1e0] sm:$0xff]  ;;  %v642_v45 = vld [vmem:[%s5463_s25 + $0x1e8] sm:$0xff]  ;;  %v611_v50 = vld [vmem:[%s5463_s25 + $0xf0] sm:$0xff] }
  0xf0   : > { %v675_v49 = vpack.c.bf16 %v642_v45, %v641_v44  ;;  %v612_v51 = vld [vmem:[%s5463_s25 + $0xf8] sm:$0xff]  ;;  %v643_v52 = vld [vmem:[%s5463_s25 + $0x1f0] sm:$0xff]  ;;  %v1361_v2 = vld [vmem:[%s5472_s14 + $0x20] sm:$0xff] }
  0xf1   : > { %v644_v53 = vld [vmem:[%s5463_s25 + $0x1f8] sm:$0xff]  ;;  %v1359_v62 = vld [vmem:[%s5472_s14 + $0x10] sm:$0xff]  ;;  %v1362_v3 = vld [vmem:[%s5472_s14 + $0x28] sm:$0xff] }
  0xf2   : > { %4363 = vmatpush3.bf16.msra.mxu0 %v4731_v12  ;;  %4604 = vmatpush3.bf16.msra.mxu1 %v4731_v12  ;;  %v4747_v12 = vld [vmem:[#allocation10 + $0x38] sm:$0xff]   ;;  %v2135_v0 = vld [vmem:[%s5478_s12 + $0x10] sm:$0xff]  ;;  %v2137_v4 = vld [vmem:[%s5478_s12 + $0x20] sm:$0xff] }
  0xf3   : > { %4364 = vmatprep.subr.bf16.mxu0 %v4732_v13  ;;  %4597 = vmatprep.subr.bf16.mxu1 %v4732_v13  ;;  %v1360_v63 = vld [vmem:[%s5472_s14 + $0x18] sm:$0xff]  ;;  %v2138_v5 = vld [vmem:[%s5478_s12 + $0x28] sm:$0xff]  ;;  %v1365_v14 = vld [vmem:[%s5472_s14 + $0x40] sm:$0xff] }
  0xf4   : > { %v2136_v1 = vld [vmem:[%s5478_s12 + $0x18] sm:$0xff]  ;;  %v1366_v15 = vld [vmem:[%s5472_s14 + $0x48] sm:$0xff]  ;;  %v2141_v16 = vld [vmem:[%s5478_s12 + $0x40] sm:$0xff] }
  0xf5   : > { %v2142_v17 = vld [vmem:[%s5478_s12 + $0x48] sm:$0xff]  ;;  %v2145_v28 = vld [vmem:[%s5478_s12 + $0x60] sm:$0xff] }
  0xf6   : > { %4365 = vmatpush3.bf16.msra.mxu0 %v4732_v13  ;;  %4605 = vmatpush3.bf16.msra.mxu1 %v4732_v13  ;;  %v4748_v13 = vld [vmem:[#allocation11 + $0x38] sm:$0xff]   ;;  %v2146_v29 = vld [vmem:[%s5478_s12 + $0x68] sm:$0xff] }
  0xf7   : > { %4430 = vmatprep.subr.bf16.mxu1 %v4733_v18  ;;  %4510 = vmatprep.subr.bf16.mxu0 %v4734_v19 }
  0xf9   : > { %4367 = vmatmul.mubr.bf16.vlgmr.msra.gmra.mrb[0].mxu0 %v646_v24  ;;  %4399 = vmatmul.mubr.bf16.vlgmr.msra.gmra.mrb[0].mxu1 %v662_v25  ;;  %v671_v25 = vpack.c.bf16 %v634_v21, %v633_v20  ;;  %v1425_v20 = vpack.c.bf16 %v1366_v15, %v1365_v14  ;;  %v2201_v21 = vpack.c.bf16 %v2142_v17, %v2141_v16 }
  0xfa   : > { %4431 = vmatpush3.bf16.msra.mxu1 %v4733_v18  ;;  %4511 = vmatpush3.bf16.msra.mxu0 %v4734_v19  ;;  %v601_v18 = vld [vmem:[%s5463_s25 + $0xa0] sm:$0xff]  ;;  %v602_v19 = vld [vmem:[%s5463_s25 + $0xa8] sm:$0xff] }
  0xfb   : > { %4370 = vmatprep.mubr.bf16.mxu0 %v647_v26  ;;  %4402 = vmatprep.mubr.bf16.mxu1 %v663_v27  ;;  %v655_v24 = vpack.c.bf16 %v602_v19, %v601_v18  ;;  %v603_v26 = vld [vmem:[%s5463_s25 + $0xb0] sm:$0xff]  ;;  %v604_v27 = vld [vmem:[%s5463_s25 + $0xb8] sm:$0xff] }
  0xfc   : > { %4432 = vmatprep.subr.bf16.mxu1 %v4735_v32  ;;  %4512 = vmatprep.subr.bf16.mxu0 %v4736_v33  ;;  %v656_v34 = vpack.c.bf16 %v604_v27, %v603_v26  ;;  %v1369_v26 = vld [vmem:[%s5472_s14 + $0x60] sm:$0xff]  ;;  %v1370_v27 = vld [vmem:[%s5472_s14 + $0x68] sm:$0xff] }
  0xfe   : > { %4433 = vmatpush3.bf16.msra.mxu1 %v4735_v32  ;;  %4513 = vmatpush3.bf16.msra.mxu0 %v4736_v33  ;;  %v637_v32 = vld [vmem:[%s5463_s25 + $0x1c0] sm:$0xff]  ;;  %v638_v33 = vld [vmem:[%s5463_s25 + $0x1c8] sm:$0xff] }
  0xff   : > { %4434 = vmatprep.subr.bf16.mxu1 %v4737_v38  ;;  %4514 = vmatprep.subr.bf16.mxu0 %v4738_v39  ;;  %v673_v37 = vpack.c.bf16 %v638_v33, %v637_v32  ;;  %v1427_v32 = vpack.c.bf16 %v1370_v27, %v1369_v26  ;;  %v2203_v33 = vpack.c.bf16 %v2146_v29, %v2145_v28 }
 0x101   : > { %4371 = vmatmul.mubr.bf16.gmra.mrb[4].mxu0 %v648_v40  ;;  %4403 = vmatmul.mubr.bf16.gmra.mrb[4].mxu1 %v664_v41  ;;  %v639_v40 = vld [vmem:[%s5463_s25 + $0x1d0] sm:$0xff]  ;;  %v640_v41 = vld [vmem:[%s5463_s25 + $0x1d8] sm:$0xff] }
 0x102   : > { %4374 = vmatprep.mubr.bf16.mxu0 %v649_v42  ;;  %4406 = vmatprep.mubr.bf16.mxu1 %v665_v43  ;;  %v609_v42 = vld [vmem:[%s5463_s25 + $0xe0] sm:$0xff]  ;;  %v610_v43 = vld [vmem:[%s5463_s25 + $0xe8] sm:$0xff] }
 0x103   : > { %4435 = vmatpush3.bf16.msra.mxu1 %v4737_v38  ;;  %4515 = vmatpush3.bf16.msra.mxu0 %v4738_v39  ;;  %v607_v38 = vld [vmem:[%s5463_s25 + $0xd0] sm:$0xff]  ;;  %v608_v39 = vld [vmem:[%s5463_s25 + $0xd8] sm:$0xff]  ;;  %s2935_s25 = sshll.u32 %s5697_s30, 4  ;;  %s5815_s25 = int_to_ptr.vmem [resolvable:$true] %s2935_s25 }
 0x104   : > { %4436 = vmatprep.subr.bf16.mxu1 %v4739_v47  ;;  %4516 = vmatprep.subr.bf16.mxu0 %v4740_v48  ;;  %v658_v46 = vpack.c.bf16 %v608_v39, %v607_v38  ;;  %v1373_v38 = vld [vmem:[%s5472_s14 + $0x80] sm:$0xff]  ;;  %v1374_v39 = vld [vmem:[%s5472_s14 + $0x88] sm:$0xff] }
 0x105   : > { %v1429_v44 = vpack.c.bf16 %v1374_v39, %v1373_v38 }
 0x107   : > { %4437 = vmatpush3.bf16.msra.mxu1 %v4739_v47  ;;  %4517 = vmatpush3.bf16.msra.mxu0 %v4740_v48  ;;  %v674_v47 = vpack.c.bf16 %v640_v41, %v639_v40  ;;  %v659_v48 = vpack.c.bf16 %v610_v43, %v609_v42  ;;  %v2149_v40 = vld [vmem:[%s5478_s12 + $0x80] sm:$0xff]  ;;  %v2150_v41 = vld [vmem:[%s5478_s12 + $0x88] sm:$0xff] }
 0x108   : > { %4438 = vmatprep.subr.bf16.mxu1 %v4741_v54  ;;  %4518 = vmatprep.subr.bf16.mxu0 %v4742_v55  ;;  %v2205_v45 = vpack.c.bf16 %v2150_v41, %v2149_v40 }
 0x109   : > { %4375 = vmatmul.mubr.bf16.gmra.mrb[8].mxu0 %v650_v56  ;;  %4407 = vmatmul.mubr.bf16.gmra.mrb[8].mxu1 %v666_v57  ;;  %v2133_v56 = vld [vmem:[%s5478_s12] sm:$0xff]  ;;  %v2134_v57 = vld [vmem:[%s5478_s12 + $0x8] sm:$0xff] }
 0x10a   : > { %4378 = vmatprep.mubr.bf16.mxu0 %v651_v58  ;;  %4410 = vmatprep.mubr.bf16.mxu1 %v667_v59  ;;  %v660_v58 = vpack.c.bf16 %v612_v51, %v611_v50  ;;  %v676_v59 = vpack.c.bf16 %v644_v53, %v643_v52  ;;  %v1377_v50 = vld [vmem:[%s5472_s14 + $0xa0] sm:$0xff]  ;;  %v1378_v51 = vld [vmem:[%s5472_s14 + $0xa8] sm:$0xff] }
 0x10b   : > { %4439 = vmatpush3.bf16.msra.mxu1 %v4741_v54  ;;  %4519 = vmatpush3.bf16.msra.mxu0 %v4742_v55  ;;  %v1357_v54 = vld [vmem:[%s5472_s14] sm:$0xff]  ;;  %v1358_v55 = vld [vmem:[%s5472_s14 + $0x8] sm:$0xff] }
 0x10c   : > { %4440 = vmatprep.subr.bf16.mxu1 %v4743_v60  ;;  %4520 = vmatprep.subr.bf16.mxu0 %v4744_v61  ;;  %v2153_v52 = vld [vmem:[%s5478_s12 + $0xa0] sm:$0xff]  ;;  %v2154_v53 = vld [vmem:[%s5478_s12 + $0xa8] sm:$0xff] }
 0x10f   : > { %4441 = vmatpush3.bf16.msra.mxu1 %v4743_v60  ;;  %4521 = vmatpush3.bf16.msra.mxu0 %v4744_v61  ;;  %v1421_v60 = vpack.c.bf16 %v1358_v55, %v1357_v54  ;;  %v2197_v61 = vpack.c.bf16 %v2134_v57, %v2133_v56  ;;  %v1431_v56 = vpack.c.bf16 %v1378_v51, %v1377_v50 }
 0x110   : > { %4442 = vmatprep.subr.bf16.mxu1 %v4745_v6  ;;  %4522 = vmatprep.subr.bf16.mxu0 %v4746_v7  ;;  %v2207_v57 = vpack.c.bf16 %v2154_v53, %v2153_v52 }
 0x111   : > { %4379 = vmatmul.mubr.bf16.gmra.mrb[12].mxu0 %v652_v8  ;;  %4411 = vmatmul.mubr.bf16.gmra.mrb[12].mxu1 %v668_v9  ;;  %v1423_v8 = vpack.c.bf16 %v1362_v3, %v1361_v2  ;;  %v2199_v9 = vpack.c.bf16 %v2138_v5, %v2137_v4 }
 0x112   : > { %4382 = vmatprep.mubr.bf16.mxu0 %v653_v10  ;;  %4414 = vmatprep.mubr.bf16.mxu1 %v669_v11  ;;  %v1363_v10 = vld [vmem:[%s5472_s14 + $0x30] sm:$0xff]  ;;  %v1364_v11 = vld [vmem:[%s5472_s14 + $0x38] sm:$0xff] }
 0x113   : > { %4443 = vmatpush3.bf16.msra.mxu1 %v4745_v6  ;;  %4523 = vmatpush3.bf16.msra.mxu0 %v4746_v7  ;;  %v1422_v6 = vpack.c.bf16 %v1360_v63, %v1359_v62  ;;  %v2198_v7 = vpack.c.bf16 %v2136_v1, %v2135_v0  ;;  %v1424_v18 = vpack.c.bf16 %v1364_v11, %v1363_v10  ;;  %v1381_v62 = vld [vmem:[%s5472_s14 + $0xc0] sm:$0xff]  ;;  %v1382_v63 = vld [vmem:[%s5472_s14 + $0xc8] sm:$0xff] }
 0x114   : > { %4444 = vmatprep.subr.bf16.mxu1 %v4747_v12  ;;  %4524 = vmatprep.subr.bf16.mxu0 %v4748_v13  ;;  %v2157_v0 = vld [vmem:[%s5478_s12 + $0xc0] sm:$0xff]  ;;  %v2158_v1 = vld [vmem:[%s5478_s12 + $0xc8] sm:$0xff]  ;;  %v1433_v4 = vpack.c.bf16 %v1382_v63, %v1381_v62 }
 0x115   : > { %v2209_v5 = vpack.c.bf16 %v2158_v1, %v2157_v0  ;;  %v1385_v10 = vld [vmem:[%s5472_s14 + $0xe0] sm:$0xff]  ;;  %v1386_v11 = vld [vmem:[%s5472_s14 + $0xe8] sm:$0xff] }
 0x116   : > { %v1435_v16 = vpack.c.bf16 %v1386_v11, %v1385_v10 }
 0x117   : > { %4445 = vmatpush3.bf16.msra.mxu1 %v4747_v12  ;;  %4525 = vmatpush3.bf16.msra.mxu0 %v4748_v13  ;;  %v2139_v12 = vld [vmem:[%s5478_s12 + $0x30] sm:$0xff]  ;;  %v2140_v13 = vld [vmem:[%s5478_s12 + $0x38] sm:$0xff] }
 0x118   : > { %v2200_v19 = vpack.c.bf16 %v2140_v13, %v2139_v12  ;;  %v2161_v12 = vld [vmem:[%s5478_s12 + $0xe0] sm:$0xff]  ;;  %v2162_v13 = vld [vmem:[%s5478_s12 + $0xe8] sm:$0xff] }
 0x119   : > { %4383 = vmatmul.mubr.bf16.gmra.mrb[16].mxu0 %v654_v22  ;;  %4415 = vmatmul.mubr.bf16.gmra.mrb[16].mxu1 %v670_v23  ;;  %v1367_v22 = vld [vmem:[%s5472_s14 + $0x50] sm:$0xff]  ;;  %v1368_v23 = vld [vmem:[%s5472_s14 + $0x58] sm:$0xff]  ;;  %v2211_v17 = vpack.c.bf16 %v2162_v13, %v2161_v12 }
 0x11a   : > { %4386 = vmatprep.mubr.bf16.mxu0 %v655_v24  ;;  %4418 = vmatprep.mubr.bf16.mxu1 %v671_v25  ;;  %v2143_v24 = vld [vmem:[%s5478_s12 + $0x50] sm:$0xff]  ;;  %v2144_v25 = vld [vmem:[%s5478_s12 + $0x58] sm:$0xff]  ;;  %v1426_v30 = vpack.c.bf16 %v1368_v23, %v1367_v22  ;;  %v1389_v22 = vld [vmem:[%s5472_s14 + $0x100] sm:$0xff] }
 0x11b   : > { %v2202_v31 = vpack.c.bf16 %v2144_v25, %v2143_v24  ;;  %v1390_v23 = vld [vmem:[%s5472_s14 + $0x108] sm:$0xff]  ;;  %v2165_v24 = vld [vmem:[%s5478_s12 + $0x100] sm:$0xff] }
 0x11c   : > { %v2166_v25 = vld [vmem:[%s5478_s12 + $0x108] sm:$0xff]  ;;  %v1437_v28 = vpack.c.bf16 %v1390_v23, %v1389_v22 }
 0x11d   : > { %v2213_v29 = vpack.c.bf16 %v2166_v25, %v2165_v24 }
 0x121   : > { %4387 = vmatmul.mubr.bf16.gmra.mrb[20].mxu0 %v656_v34  ;;  %4419 = vmatmul.mubr.bf16.gmra.mrb[20].mxu1 %v672_v35  ;;  %v1371_v34 = vld [vmem:[%s5472_s14 + $0x70] sm:$0xff]  ;;  %v1372_v35 = vld [vmem:[%s5472_s14 + $0x78] sm:$0xff] }
 0x122   : > { %4390 = vmatprep.mubr.bf16.mxu0 %v657_v36  ;;  %4422 = vmatprep.mubr.bf16.mxu1 %v673_v37  ;;  %v2147_v36 = vld [vmem:[%s5478_s12 + $0x70] sm:$0xff]  ;;  %v2148_v37 = vld [vmem:[%s5478_s12 + $0x78] sm:$0xff]  ;;  %v1428_v42 = vpack.c.bf16 %v1372_v35, %v1371_v34  ;;  %v1393_v34 = vld [vmem:[%s5472_s14 + $0x120] sm:$0xff] }
 0x123   : > { %v2204_v43 = vpack.c.bf16 %v2148_v37, %v2147_v36  ;;  %v1394_v35 = vld [vmem:[%s5472_s14 + $0x128] sm:$0xff]  ;;  %v2169_v36 = vld [vmem:[%s5478_s12 + $0x120] sm:$0xff] }
 0x124   : > { %v2170_v37 = vld [vmem:[%s5478_s12 + $0x128] sm:$0xff]  ;;  %v1439_v40 = vpack.c.bf16 %v1394_v35, %v1393_v34 }
 0x125   : > { %v2215_v41 = vpack.c.bf16 %v2170_v37, %v2169_v36 }
 0x129   : > { %4391 = vmatmul.mubr.bf16.gmra.mrb[24].mxu0 %v658_v46  ;;  %4423 = vmatmul.mubr.bf16.gmra.mrb[24].mxu1 %v674_v47  ;;  %v1375_v46 = vld [vmem:[%s5472_s14 + $0x90] sm:$0xff]  ;;  %v1376_v47 = vld [vmem:[%s5472_s14 + $0x98] sm:$0xff] }
 0x12a   : > { %4394 = vmatprep.mubr.bf16.mxu0 %v659_v48  ;;  %4426 = vmatprep.mubr.bf16.mxu1 %v675_v49  ;;  %v2151_v48 = vld [vmem:[%s5478_s12 + $0x90] sm:$0xff]  ;;  %v2152_v49 = vld [vmem:[%s5478_s12 + $0x98] sm:$0xff]  ;;  %v1430_v54 = vpack.c.bf16 %v1376_v47, %v1375_v46  ;;  %v1397_v46 = vld [vmem:[%s5472_s14 + $0x140] sm:$0xff] }
 0x12b   : > { %v2206_v55 = vpack.c.bf16 %v2152_v49, %v2151_v48  ;;  %v1398_v47 = vld [vmem:[%s5472_s14 + $0x148] sm:$0xff]  ;;  %v2173_v48 = vld [vmem:[%s5478_s12 + $0x140] sm:$0xff] }
 0x12c   : > { %v2174_v49 = vld [vmem:[%s5478_s12 + $0x148] sm:$0xff]  ;;  %v1441_v52 = vpack.c.bf16 %v1398_v47, %v1397_v46 }
 0x12d   : > { %v2217_v53 = vpack.c.bf16 %v2174_v49, %v2173_v48 }
 0x131   : > { %4395 = vmatmul.mubr.bf16.gmra.mrb[28].mxu0 %v660_v58  ;;  %4427 = vmatmul.mubr.bf16.gmra.mrb[28].mxu1 %v676_v59  ;;  %v1379_v58 = vld [vmem:[%s5472_s14 + $0xb0] sm:$0xff]  ;;  %v1380_v59 = vld [vmem:[%s5472_s14 + $0xb8] sm:$0xff] }
 0x132   : > { %4446 = vmatprep.mubr.bf16.mxu1 %v1421_v60  ;;  %4526 = vmatprep.mubr.bf16.mxu0 %v2197_v61  ;;  %v2155_v60 = vld [vmem:[%s5478_s12 + $0xb0] sm:$0xff]  ;;  %v2156_v61 = vld [vmem:[%s5478_s12 + $0xb8] sm:$0xff]  ;;  %v1432_v2 = vpack.c.bf16 %v1380_v59, %v1379_v58  ;;  %v1401_v58 = vld [vmem:[%s5472_s14 + $0x160] sm:$0xff] }
 0x133   : > { %v2208_v3 = vpack.c.bf16 %v2156_v61, %v2155_v60  ;;  %v1402_v59 = vld [vmem:[%s5472_s14 + $0x168] sm:$0xff]  ;;  %v2177_v60 = vld [vmem:[%s5478_s12 + $0x160] sm:$0xff] }
 0x134   : > { %v2178_v61 = vld [vmem:[%s5478_s12 + $0x168] sm:$0xff]  ;;  %v1443_v0 = vpack.c.bf16 %v1402_v59, %v1401_v58 }
 0x135   : > { %v2219_v1 = vpack.c.bf16 %v2178_v61, %v2177_v60 }
 0x139   : > { %4447 = vmatmul.mubr.bf16.vlgmr.msra.gmra.mrb[32].mxu1 %v1422_v6  ;;  %4527 = vmatmul.mubr.bf16.vlgmr.msra.gmra.mrb[32].mxu0 %v2198_v7  ;;  %v1383_v6 = vld [vmem:[%s5472_s14 + $0xd0] sm:$0xff]  ;;  %v1384_v7 = vld [vmem:[%s5472_s14 + $0xd8] sm:$0xff] }
 0x13a   : > { %4450 = vmatprep.mubr.bf16.mxu1 %v1423_v8  ;;  %4530 = vmatprep.mubr.bf16.mxu0 %v2199_v9  ;;  %v2159_v8 = vld [vmem:[%s5478_s12 + $0xd0] sm:$0xff]  ;;  %v2160_v9 = vld [vmem:[%s5478_s12 + $0xd8] sm:$0xff]  ;;  %v1434_v14 = vpack.c.bf16 %v1384_v7, %v1383_v6  ;;  %v1405_v6 = vld [vmem:[%s5472_s14 + $0x180] sm:$0xff] }
 0x13b   : > { %v2210_v15 = vpack.c.bf16 %v2160_v9, %v2159_v8  ;;  %v1406_v7 = vld [vmem:[%s5472_s14 + $0x188] sm:$0xff]  ;;  %v2181_v8 = vld [vmem:[%s5478_s12 + $0x180] sm:$0xff] }
 0x13c   : > { %v2182_v9 = vld [vmem:[%s5478_s12 + $0x188] sm:$0xff]  ;;  %v1445_v12 = vpack.c.bf16 %v1406_v7, %v1405_v6 }
 0x13d   : > { %v2221_v13 = vpack.c.bf16 %v2182_v9, %v2181_v8 }
 0x141   : > { %4451 = vmatmul.mubr.bf16.gmra.mrb[36].mxu1 %v1424_v18  ;;  %4531 = vmatmul.mubr.bf16.gmra.mrb[36].mxu0 %v2200_v19  ;;  %v1387_v18 = vld [vmem:[%s5472_s14 + $0xf0] sm:$0xff]  ;;  %v1388_v19 = vld [vmem:[%s5472_s14 + $0xf8] sm:$0xff] }
 0x142   : > { %4454 = vmatprep.mubr.bf16.mxu1 %v1425_v20  ;;  %4534 = vmatprep.mubr.bf16.mxu0 %v2201_v21  ;;  %v2163_v20 = vld [vmem:[%s5478_s12 + $0xf0] sm:$0xff]  ;;  %v2164_v21 = vld [vmem:[%s5478_s12 + $0xf8] sm:$0xff]  ;;  %v1436_v26 = vpack.c.bf16 %v1388_v19, %v1387_v18  ;;  %v1409_v18 = vld [vmem:[%s5472_s14 + $0x1a0] sm:$0xff] }
 0x143   : > { %v2212_v27 = vpack.c.bf16 %v2164_v21, %v2163_v20  ;;  %v1410_v19 = vld [vmem:[%s5472_s14 + $0x1a8] sm:$0xff]  ;;  %v2185_v20 = vld [vmem:[%s5478_s12 + $0x1a0] sm:$0xff] }
 0x144   : > { %v2186_v21 = vld [vmem:[%s5478_s12 + $0x1a8] sm:$0xff]  ;;  %v1447_v24 = vpack.c.bf16 %v1410_v19, %v1409_v18 }
 0x145   : > { %v2223_v25 = vpack.c.bf16 %v2186_v21, %v2185_v20 }
 0x149   : > { %4455 = vmatmul.mubr.bf16.gmra.mrb[40].mxu1 %v1426_v30  ;;  %4535 = vmatmul.mubr.bf16.gmra.mrb[40].mxu0 %v2202_v31  ;;  %v1391_v30 = vld [vmem:[%s5472_s14 + $0x110] sm:$0xff]  ;;  %v1392_v31 = vld [vmem:[%s5472_s14 + $0x118] sm:$0xff] }
 0x14a   : > { %4458 = vmatprep.mubr.bf16.mxu1 %v1427_v32  ;;  %4538 = vmatprep.mubr.bf16.mxu0 %v2203_v33  ;;  %v2167_v32 = vld [vmem:[%s5478_s12 + $0x110] sm:$0xff]  ;;  %v2168_v33 = vld [vmem:[%s5478_s12 + $0x118] sm:$0xff]  ;;  %v1438_v38 = vpack.c.bf16 %v1392_v31, %v1391_v30  ;;  %v1413_v30 = vld [vmem:[%s5472_s14 + $0x1c0] sm:$0xff] }
 0x14b   : > { %v2214_v39 = vpack.c.bf16 %v2168_v33, %v2167_v32  ;;  %v1414_v31 = vld [vmem:[%s5472_s14 + $0x1c8] sm:$0xff]  ;;  %v2189_v32 = vld [vmem:[%s5478_s12 + $0x1c0] sm:$0xff] }
 0x14c   : > { %v2190_v33 = vld [vmem:[%s5478_s12 + $0x1c8] sm:$0xff]  ;;  %v1449_v36 = vpack.c.bf16 %v1414_v31, %v1413_v30 }
 0x14d   : > { %v2225_v37 = vpack.c.bf16 %v2190_v33, %v2189_v32 }
 0x151   : > { %4459 = vmatmul.mubr.bf16.gmra.mrb[44].mxu1 %v1428_v42  ;;  %4539 = vmatmul.mubr.bf16.gmra.mrb[44].mxu0 %v2204_v43  ;;  %v1395_v42 = vld [vmem:[%s5472_s14 + $0x130] sm:$0xff]  ;;  %v1396_v43 = vld [vmem:[%s5472_s14 + $0x138] sm:$0xff] }
 0x152   : > { %4462 = vmatprep.mubr.bf16.mxu1 %v1429_v44  ;;  %4542 = vmatprep.mubr.bf16.mxu0 %v2205_v45  ;;  %v2171_v44 = vld [vmem:[%s5478_s12 + $0x130] sm:$0xff]  ;;  %v2172_v45 = vld [vmem:[%s5478_s12 + $0x138] sm:$0xff]  ;;  %v1440_v50 = vpack.c.bf16 %v1396_v43, %v1395_v42  ;;  %v1417_v42 = vld [vmem:[%s5472_s14 + $0x1e0] sm:$0xff] }
 0x153   : > { %v2216_v51 = vpack.c.bf16 %v2172_v45, %v2171_v44  ;;  %v1418_v43 = vld [vmem:[%s5472_s14 + $0x1e8] sm:$0xff]  ;;  %v2193_v44 = vld [vmem:[%s5478_s12 + $0x1e0] sm:$0xff] }
 0x154   : > { %v2194_v45 = vld [vmem:[%s5478_s12 + $0x1e8] sm:$0xff]  ;;  %v1451_v48 = vpack.c.bf16 %v1418_v43, %v1417_v42 }
 0x155   : > { %v2227_v49 = vpack.c.bf16 %v2194_v45, %v2193_v44 }
 0x159   : > { %4463 = vmatmul.mubr.bf16.gmra.mrb[48].mxu1 %v1430_v54  ;;  %4543 = vmatmul.mubr.bf16.gmra.mrb[48].mxu0 %v2206_v55  ;;  %v1399_v54 = vld [vmem:[%s5472_s14 + $0x150] sm:$0xff]  ;;  %v1400_v55 = vld [vmem:[%s5472_s14 + $0x158] sm:$0xff] }
 0x15a   : > { %4466 = vmatprep.mubr.bf16.mxu1 %v1431_v56  ;;  %4546 = vmatprep.mubr.bf16.mxu0 %v2207_v57  ;;  %v2175_v56 = vld [vmem:[%s5478_s12 + $0x150] sm:$0xff]  ;;  %v2176_v57 = vld [vmem:[%s5478_s12 + $0x158] sm:$0xff]  ;;  %v1442_v62 = vpack.c.bf16 %v1400_v55, %v1399_v54 }
 0x15b   : > { %v2218_v63 = vpack.c.bf16 %v2176_v57, %v2175_v56  ;;  %v5683_v56 = vld [vmem:[%s6135_s4] ss:$0 sm:$0xff] }
 0x161   : > { %4467 = vmatmul.mubr.bf16.gmra.mrb[52].mxu1 %v1432_v2  ;;  %4547 = vmatmul.mubr.bf16.gmra.mrb[52].mxu0 %v2208_v3  ;;  %v1403_v2 = vld [vmem:[%s5472_s14 + $0x170] sm:$0xff]  ;;  %v1404_v3 = vld [vmem:[%s5472_s14 + $0x178] sm:$0xff] }
 0x162   : > { %4470 = vmatprep.mubr.bf16.mxu1 %v1433_v4  ;;  %4550 = vmatprep.mubr.bf16.mxu0 %v2209_v5  ;;  %v2179_v4 = vld [vmem:[%s5478_s12 + $0x170] sm:$0xff]  ;;  %v2180_v5 = vld [vmem:[%s5478_s12 + $0x178] sm:$0xff]  ;;  %v1444_v10 = vpack.c.bf16 %v1404_v3, %v1403_v2 }
 0x163   : > { %v2220_v11 = vpack.c.bf16 %v2180_v5, %v2179_v4 }
 0x169   : > { %4471 = vmatmul.mubr.bf16.gmra.mrb[56].mxu1 %v1434_v14  ;;  %4551 = vmatmul.mubr.bf16.gmra.mrb[56].mxu0 %v2210_v15  ;;  %v1407_v14 = vld [vmem:[%s5472_s14 + $0x190] sm:$0xff]  ;;  %v1408_v15 = vld [vmem:[%s5472_s14 + $0x198] sm:$0xff] }
 0x16a   : > { %4474 = vmatprep.mubr.bf16.mxu1 %v1435_v16  ;;  %4554 = vmatprep.mubr.bf16.mxu0 %v2211_v17  ;;  %v2183_v16 = vld [vmem:[%s5478_s12 + $0x190] sm:$0xff]  ;;  %v2184_v17 = vld [vmem:[%s5478_s12 + $0x198] sm:$0xff]  ;;  %v1446_v22 = vpack.c.bf16 %v1408_v15, %v1407_v14 }
 0x16b   : > { %v2222_v23 = vpack.c.bf16 %v2184_v17, %v2183_v16 }
 0x171   : > { %4475 = vmatmul.mubr.bf16.gmra.mrb[60].mxu1 %v1436_v26  ;;  %4555 = vmatmul.mubr.bf16.gmra.mrb[60].mxu0 %v2212_v27  ;;  %v1411_v26 = vld [vmem:[%s5472_s14 + $0x1b0] sm:$0xff]  ;;  %v1412_v27 = vld [vmem:[%s5472_s14 + $0x1b8] sm:$0xff] }
 0x172   : > { %4478 = vmatprep.mubr.bf16.mxu1 %v1437_v28  ;;  %4558 = vmatprep.mubr.bf16.mxu0 %v2213_v29  ;;  %v2187_v28 = vld [vmem:[%s5478_s12 + $0x1b0] sm:$0xff]  ;;  %v2188_v29 = vld [vmem:[%s5478_s12 + $0x1b8] sm:$0xff]  ;;  %v1448_v34 = vpack.c.bf16 %v1412_v27, %v1411_v26 }
 0x173   : > { %v2224_v35 = vpack.c.bf16 %v2188_v29, %v2187_v28 }
 0x179   : > { %4479 = vmatmul.mubr.bf16.gmra.mrb[64].mxu1 %v1438_v38  ;;  %4559 = vmatmul.mubr.bf16.gmra.mrb[64].mxu0 %v2214_v39  ;;  %v1415_v38 = vld [vmem:[%s5472_s14 + $0x1d0] sm:$0xff]  ;;  %v1416_v39 = vld [vmem:[%s5472_s14 + $0x1d8] sm:$0xff] }
 0x17a   : > { %4482 = vmatprep.mubr.bf16.mxu1 %v1439_v40  ;;  %4562 = vmatprep.mubr.bf16.mxu0 %v2215_v41  ;;  %v2191_v40 = vld [vmem:[%s5478_s12 + $0x1d0] sm:$0xff]  ;;  %v2192_v41 = vld [vmem:[%s5478_s12 + $0x1d8] sm:$0xff]  ;;  %v1450_v46 = vpack.c.bf16 %v1416_v39, %v1415_v38 }
 0x17b   : > { %v2226_v47 = vpack.c.bf16 %v2192_v41, %v2191_v40 }
 0x181   : > { %4483 = vmatmul.mubr.bf16.gmra.mrb[68].mxu1 %v1440_v50  ;;  %4563 = vmatmul.mubr.bf16.gmra.mrb[68].mxu0 %v2216_v51  ;;  %v1419_v50 = vld [vmem:[%s5472_s14 + $0x1f0] sm:$0xff]  ;;  %v1420_v51 = vld [vmem:[%s5472_s14 + $0x1f8] sm:$0xff]  ;;  %s4923_s14 = scalar_lea.vmem %s5815_s25, 4096 }
 0x182   : > { %4486 = vmatprep.mubr.bf16.mxu1 %v1441_v52  ;;  %4566 = vmatprep.mubr.bf16.mxu0 %v2217_v53  ;;  %v2195_v52 = vld [vmem:[%s5478_s12 + $0x1f0] sm:$0xff]  ;;  %v2196_v53 = vld [vmem:[%s5478_s12 + $0x1f8] sm:$0xff]  ;;  %v1452_v54 = vpack.c.bf16 %v1420_v51, %v1419_v50  ;;  %p4924_p11 = scmp.ne.s32.totalorder %s5815_s25, %s4923_s14  ;;  %s5089_s12 = smov [#allocation13]  }
 0x183   : > { %v2228_v55 = vpack.c.bf16 %v2196_v53, %v2195_v52  ;;  %s4927_s26 = sshll.u32 %s5089_s12, 4  ;;  %s4928_s26 = int_to_ptr.vmem [resolvable:$false] %s4927_s26 }
 0x184   : > { %p4925_p1 = pnand %p4924_p11, %p6224_p10  ;;  %s4929_s13 = scalar_lea.vmem %s4928_s26, 8192 }
 0x185   : > { %p4930_p13 = scmp.lt.s32.totalorder %s5815_s25, %s4928_s26  ;;  %p4931_p5 = scmp.lt.s32.totalorder %s4929_s13, %s4923_s14 }
 0x186   : > { %p4926_p0 = pneg %p4925_p1 }
 0x187   : > { %p4932_p3 = por %p4931_p5, %p4930_p13 }
 0x189   : > { %4487 = vmatmul.mubr.bf16.gmra.mrb[72].mxu1 %v1442_v62  ;;  %4567 = vmatmul.mubr.bf16.gmra.mrb[72].mxu0 %v2218_v63  ;;  %p4933_p6 = pnand %p4932_p3, %p4926_p0 }
 0x18a   : > { %4490 = vmatprep.mubr.bf16.mxu1 %v1443_v0  ;;  %4570 = vmatprep.mubr.bf16.mxu0 %v2219_v1 }
 0x191   : > { %4491 = vmatmul.mubr.bf16.gmra.mrb[76].mxu1 %v1444_v10  ;;  %4571 = vmatmul.mubr.bf16.gmra.mrb[76].mxu0 %v2220_v11 }
 0x192   : > { %4494 = vmatprep.mubr.bf16.mxu1 %v1445_v12  ;;  %4574 = vmatprep.mubr.bf16.mxu0 %v2221_v13 }
 0x199   : > { %4495 = vmatmul.mubr.bf16.gmra.mrb[80].mxu1 %v1446_v22  ;;  %4575 = vmatmul.mubr.bf16.gmra.mrb[80].mxu0 %v2222_v23 }
 0x19a   : > { %4498 = vmatprep.mubr.bf16.mxu1 %v1447_v24  ;;  %4578 = vmatprep.mubr.bf16.mxu0 %v2223_v25 }
 0x1a1   : > { %4499 = vmatmul.mubr.bf16.gmra.mrb[84].mxu1 %v1448_v34  ;;  %4579 = vmatmul.mubr.bf16.gmra.mrb[84].mxu0 %v2224_v35 }
 0x1a2   : > { %4502 = vmatprep.mubr.bf16.mxu1 %v1449_v36  ;;  %4582 = vmatprep.mubr.bf16.mxu0 %v2225_v37 }
 0x1a9   : > { %4503 = vmatmul.mubr.bf16.gmra.mrb[88].mxu1 %v1450_v46  ;;  %4583 = vmatmul.mubr.bf16.gmra.mrb[88].mxu0 %v2226_v47 }
 0x1aa   : > { %4506 = vmatprep.mubr.bf16.mxu1 %v1451_v48  ;;  %4586 = vmatprep.mubr.bf16.mxu0 %v2227_v49 }
 0x1b1   : > { %4507 = vmatmul.mubr.bf16.gmra.mrb[92].mxu1 %v1452_v54  ;;  %4587 = vmatmul.mubr.bf16.gmra.mrb[92].mxu0 %v2228_v55 }
 0x1cc   : > { %v4368_v57 = vpop.f32.mrb[0].mxu0  ;;  %v4400_v58 = vpop.f32.mrb[0].mxu1 }
 0x1cd   : > { %v791_v59 = vadd.f32 %v4368_v57, %v5683_v56  ;;  %v782_v60 = vpop.f32.mrb[1].mxu0  ;;  %v910_v61 = vpop.f32.mrb[1].mxu1  ;;  %v919_v0 = vadd.f32 %v4400_v58, %v5683_v56 }
 0x1ce   : > { %v4369_v62 = vpop.f32.mrb[2].mxu0  ;;  %v4401_v63 = vpop.f32.mrb[2].mxu1  ;;  %v783_v5 = vadd.f32 %v5683_v56, %v782_v60  ;;  %v911_v6 = vadd.f32 %v5683_v56, %v910_v61 }
 0x1cf   : > { %v794_v1 = vadd.f32 %v4369_v62, %v5683_v56  ;;  %v922_v2 = vadd.f32 %v4401_v63, %v5683_v56  ;;  %v785_v3 = vpop.f32.mrb[3].mxu0  ;;  %v913_v4 = vpop.f32.mrb[3].mxu1 }
 0x1d0   : > { %v786_v7 = vadd.f32 %v5683_v56, %v785_v3  ;;  %v914_v8 = vadd.f32 %v5683_v56, %v913_v4 }
 0x1d1   : > { %v3665_v9 = vpack.c.bf16 %v794_v1, %v791_v59  ;;  %v3745_v10 = vpack.c.bf16 %v922_v2, %v919_v0 }
 0x1d2   : > { %v3660_v11 = vpack.c.bf16 %v786_v7, %v783_v5  ;;  %v3740_v12 = vpack.c.bf16 %v914_v8, %v911_v6 }
 0x1d3   : > { %4137 = vst [vmem:[%s5697_s30 + $0x8] sm:$0xff] %v3665_v9   ;;  %4153 = vst [vmem:[%s5697_s30 + $0x88] sm:$0xff] %v3745_v10  }
 0x1d4   : > { %3661 = vst [vmem:[%s5697_s30] sm:$0xff] %v3660_v11   ;;  %4152 = vst [vmem:[%s5697_s30 + $0x80] sm:$0xff] %v3740_v12   ;;  %v4372_v13 = vpop.f32.mrb[4].mxu0  ;;  %v4404_v14 = vpop.f32.mrb[4].mxu1 }
 0x1d5   : > { %v807_v15 = vadd.f32 %v4372_v13, %v5683_v56  ;;  %v798_v16 = vpop.f32.mrb[5].mxu0  ;;  %v926_v17 = vpop.f32.mrb[5].mxu1  ;;  %v935_v20 = vadd.f32 %v4404_v14, %v5683_v56 }
 0x1d6   : > { %v4373_v18 = vpop.f32.mrb[6].mxu0  ;;  %v4405_v19 = vpop.f32.mrb[6].mxu1  ;;  %v799_v25 = vadd.f32 %v5683_v56, %v798_v16  ;;  %v927_v26 = vadd.f32 %v5683_v56, %v926_v17 }
 0x1d7   : > { %v810_v21 = vadd.f32 %v4373_v18, %v5683_v56  ;;  %v938_v22 = vadd.f32 %v4405_v19, %v5683_v56  ;;  %v801_v23 = vpop.f32.mrb[7].mxu0  ;;  %v929_v24 = vpop.f32.mrb[7].mxu1 }
 0x1d8   : > { %v802_v27 = vadd.f32 %v5683_v56, %v801_v23  ;;  %v930_v28 = vadd.f32 %v5683_v56, %v929_v24 }
 0x1d9   : > { %v3675_v29 = vpack.c.bf16 %v810_v21, %v807_v15  ;;  %v3755_v30 = vpack.c.bf16 %v938_v22, %v935_v20 }
 0x1da   : > { %v3670_v31 = vpack.c.bf16 %v802_v27, %v799_v25  ;;  %v3750_v32 = vpack.c.bf16 %v930_v28, %v927_v26 }
 0x1db   : > { %4139 = vst [vmem:[%s5697_s30 + $0x18] sm:$0xff] %v3675_v29   ;;  %4155 = vst [vmem:[%s5697_s30 + $0x98] sm:$0xff] %v3755_v30  }
 0x1dc   : > { %4138 = vst [vmem:[%s5697_s30 + $0x10] sm:$0xff] %v3670_v31   ;;  %4154 = vst [vmem:[%s5697_s30 + $0x90] sm:$0xff] %v3750_v32   ;;  %v4376_v33 = vpop.f32.mrb[8].mxu0  ;;  %v4408_v34 = vpop.f32.mrb[8].mxu1 }
 0x1dd   : > { %v823_v35 = vadd.f32 %v4376_v33, %v5683_v56  ;;  %v814_v36 = vpop.f32.mrb[9].mxu0  ;;  %v942_v37 = vpop.f32.mrb[9].mxu1  ;;  %v951_v40 = vadd.f32 %v4408_v34, %v5683_v56 }
 0x1de   : > { %v4377_v38 = vpop.f32.mrb[10].mxu0  ;;  %v4409_v39 = vpop.f32.mrb[10].mxu1  ;;  %v815_v45 = vadd.f32 %v5683_v56, %v814_v36  ;;  %v943_v46 = vadd.f32 %v5683_v56, %v942_v37 }
 0x1df   : > { %v826_v41 = vadd.f32 %v4377_v38, %v5683_v56  ;;  %v954_v42 = vadd.f32 %v4409_v39, %v5683_v56  ;;  %v817_v43 = vpop.f32.mrb[11].mxu0  ;;  %v945_v44 = vpop.f32.mrb[11].mxu1 }
 0x1e0   : > { %v818_v47 = vadd.f32 %v5683_v56, %v817_v43  ;;  %v946_v48 = vadd.f32 %v5683_v56, %v945_v44 }
 0x1e1   : > { %v3685_v49 = vpack.c.bf16 %v826_v41, %v823_v35  ;;  %v3765_v50 = vpack.c.bf16 %v954_v42, %v951_v40 }
 0x1e2   : > { %v3680_v51 = vpack.c.bf16 %v818_v47, %v815_v45  ;;  %v3760_v52 = vpack.c.bf16 %v946_v48, %v943_v46 }
 0x1e3   : > { %4141 = vst [vmem:[%s5697_s30 + $0x28] sm:$0xff] %v3685_v49   ;;  %4157 = vst [vmem:[%s5697_s30 + $0xa8] sm:$0xff] %v3765_v50  }
 0x1e4   : > { %4140 = vst [vmem:[%s5697_s30 + $0x20] sm:$0xff] %v3680_v51   ;;  %4156 = vst [vmem:[%s5697_s30 + $0xa0] sm:$0xff] %v3760_v52   ;;  %v4380_v53 = vpop.f32.mrb[12].mxu0  ;;  %v4412_v54 = vpop.f32.mrb[12].mxu1 }
 0x1e5   : > { %v839_v55 = vadd.f32 %v4380_v53, %v5683_v56  ;;  %v830_v57 = vpop.f32.mrb[13].mxu0  ;;  %v958_v58 = vpop.f32.mrb[13].mxu1  ;;  %v967_v61 = vadd.f32 %v4412_v54, %v5683_v56 }
 0x1e6   : > { %v4381_v59 = vpop.f32.mrb[14].mxu0  ;;  %v4413_v60 = vpop.f32.mrb[14].mxu1  ;;  %v831_v2 = vadd.f32 %v5683_v56, %v830_v57  ;;  %v959_v3 = vadd.f32 %v5683_v56, %v958_v58 }
 0x1e7   : > { %v842_v62 = vadd.f32 %v4381_v59, %v5683_v56  ;;  %v970_v63 = vadd.f32 %v4413_v60, %v5683_v56  ;;  %v833_v0 = vpop.f32.mrb[15].mxu0  ;;  %v961_v1 = vpop.f32.mrb[15].mxu1 }
 0x1e8   : > { %v834_v4 = vadd.f32 %v5683_v56, %v833_v0  ;;  %v962_v5 = vadd.f32 %v5683_v56, %v961_v1 }
 0x1e9   : > { %v3695_v6 = vpack.c.bf16 %v842_v62, %v839_v55  ;;  %v3775_v7 = vpack.c.bf16 %v970_v63, %v967_v61 }
 0x1ea   : > { %v3690_v8 = vpack.c.bf16 %v834_v4, %v831_v2  ;;  %v3770_v9 = vpack.c.bf16 %v962_v5, %v959_v3 }
 0x1eb   : > { %4143 = vst [vmem:[%s5697_s30 + $0x38] sm:$0xff] %v3695_v6   ;;  %4159 = vst [vmem:[%s5697_s30 + $0xb8] sm:$0xff] %v3775_v7  }
 0x1ec   : > { %4142 = vst [vmem:[%s5697_s30 + $0x30] sm:$0xff] %v3690_v8   ;;  %4158 = vst [vmem:[%s5697_s30 + $0xb0] sm:$0xff] %v3770_v9   ;;  %v4384_v10 = vpop.f32.mrb[16].mxu0  ;;  %v4416_v11 = vpop.f32.mrb[16].mxu1 }
 0x1ed   : > { %v855_v12 = vadd.f32 %v4384_v10, %v5683_v56  ;;  %v846_v13 = vpop.f32.mrb[17].mxu0  ;;  %v974_v14 = vpop.f32.mrb[17].mxu1  ;;  %v983_v17 = vadd.f32 %v4416_v11, %v5683_v56 }
 0x1ee   : > { %v4385_v15 = vpop.f32.mrb[18].mxu0  ;;  %v4417_v16 = vpop.f32.mrb[18].mxu1  ;;  %v847_v22 = vadd.f32 %v5683_v56, %v846_v13  ;;  %v975_v23 = vadd.f32 %v5683_v56, %v974_v14 }
 0x1ef   : > { %v858_v18 = vadd.f32 %v4385_v15, %v5683_v56  ;;  %v986_v19 = vadd.f32 %v4417_v16, %v5683_v56  ;;  %v849_v20 = vpop.f32.mrb[19].mxu0  ;;  %v977_v21 = vpop.f32.mrb[19].mxu1 }
 0x1f0   : > { %v850_v24 = vadd.f32 %v5683_v56, %v849_v20  ;;  %v978_v25 = vadd.f32 %v5683_v56, %v977_v21 }
 0x1f1   : > { %v3705_v26 = vpack.c.bf16 %v858_v18, %v855_v12  ;;  %v3785_v27 = vpack.c.bf16 %v986_v19, %v983_v17 }
 0x1f2   : > { %v3700_v28 = vpack.c.bf16 %v850_v24, %v847_v22  ;;  %v3780_v29 = vpack.c.bf16 %v978_v25, %v975_v23 }
 0x1f3   : > { %4145 = vst [vmem:[%s5697_s30 + $0x48] sm:$0xff] %v3705_v26   ;;  %4161 = vst [vmem:[%s5697_s30 + $0xc8] sm:$0xff] %v3785_v27   ;;  %v5786_v27 = vld [vmem:[%s6220_s1] ss:$0 sm:$0xff] }
 0x1f4   : > { %4144 = vst [vmem:[%s5697_s30 + $0x40] sm:$0xff] %v3700_v28   ;;  %4160 = vst [vmem:[%s5697_s30 + $0xc0] sm:$0xff] %v3780_v29   ;;  %v4388_v30 = vpop.f32.mrb[20].mxu0  ;;  %v4420_v31 = vpop.f32.mrb[20].mxu1  ;;  %v5795_v29 = vld [vmem:[%s6221_s27] ss:$0 sm:$0xff] }
 0x1f5   : > { %v871_v32 = vadd.f32 %v4388_v30, %v5683_v56  ;;  %v862_v33 = vpop.f32.mrb[21].mxu0  ;;  %v990_v34 = vpop.f32.mrb[21].mxu1  ;;  %v999_v37 = vadd.f32 %v4420_v31, %v5683_v56 }
 0x1f6   : > { %v4389_v35 = vpop.f32.mrb[22].mxu0  ;;  %v4421_v36 = vpop.f32.mrb[22].mxu1  ;;  %v863_v42 = vadd.f32 %v5683_v56, %v862_v33  ;;  %v991_v43 = vadd.f32 %v5683_v56, %v990_v34 }
 0x1f7   : > { %v874_v38 = vadd.f32 %v4389_v35, %v5683_v56  ;;  %v1002_v39 = vadd.f32 %v4421_v36, %v5683_v56  ;;  %v865_v40 = vpop.f32.mrb[23].mxu0  ;;  %v993_v41 = vpop.f32.mrb[23].mxu1 }
 0x1f8   : > { %v866_v44 = vadd.f32 %v5683_v56, %v865_v40  ;;  %v994_v45 = vadd.f32 %v5683_v56, %v993_v41 }
 0x1f9   : > { %v3715_v46 = vpack.c.bf16 %v874_v38, %v871_v32  ;;  %v3795_v47 = vpack.c.bf16 %v1002_v39, %v999_v37 }
 0x1fa   : > { %v3710_v48 = vpack.c.bf16 %v866_v44, %v863_v42  ;;  %v3790_v49 = vpack.c.bf16 %v994_v45, %v991_v43 }
 0x1fb   : > { %4147 = vst [vmem:[%s5697_s30 + $0x58] sm:$0xff] %v3715_v46   ;;  %4163 = vst [vmem:[%s5697_s30 + $0xd8] sm:$0xff] %v3795_v47  }
 0x1fc   : > { %4146 = vst [vmem:[%s5697_s30 + $0x50] sm:$0xff] %v3710_v48   ;;  %4162 = vst [vmem:[%s5697_s30 + $0xd0] sm:$0xff] %v3790_v49   ;;  %v4392_v50 = vpop.f32.mrb[24].mxu0  ;;  %v4424_v51 = vpop.f32.mrb[24].mxu1 }
 0x1fd   : > { %v887_v52 = vadd.f32 %v4392_v50, %v5683_v56  ;;  %v878_v53 = vpop.f32.mrb[25].mxu0  ;;  %v1006_v54 = vpop.f32.mrb[25].mxu1  ;;  %v1015_v58 = vadd.f32 %v4424_v51, %v5683_v56 }
 0x1fe   : > { %v4393_v55 = vpop.f32.mrb[26].mxu0  ;;  %v4425_v57 = vpop.f32.mrb[26].mxu1  ;;  %v879_v63 = vadd.f32 %v5683_v56, %v878_v53  ;;  %v1007_v0 = vadd.f32 %v5683_v56, %v1006_v54 }
 0x1ff   : > { %v890_v59 = vadd.f32 %v4393_v55, %v5683_v56  ;;  %v1018_v60 = vadd.f32 %v4425_v57, %v5683_v56  ;;  %v881_v61 = vpop.f32.mrb[27].mxu0  ;;  %v1009_v62 = vpop.f32.mrb[27].mxu1 }
 0x200   : > { %v882_v1 = vadd.f32 %v5683_v56, %v881_v61  ;;  %v1010_v2 = vadd.f32 %v5683_v56, %v1009_v62 }
 0x201   : > { %v3725_v3 = vpack.c.bf16 %v890_v59, %v887_v52  ;;  %v3805_v4 = vpack.c.bf16 %v1018_v60, %v1015_v58 }
 0x202   : > { %v3720_v5 = vpack.c.bf16 %v882_v1, %v879_v63  ;;  %v3800_v6 = vpack.c.bf16 %v1010_v2, %v1007_v0 }
 0x203   : > { %4149 = vst [vmem:[%s5697_s30 + $0x68] sm:$0xff] %v3725_v3   ;;  %4165 = vst [vmem:[%s5697_s30 + $0xe8] sm:$0xff] %v3805_v4  }
 0x204   : > { %4148 = vst [vmem:[%s5697_s30 + $0x60] sm:$0xff] %v3720_v5   ;;  %4164 = vst [vmem:[%s5697_s30 + $0xe0] sm:$0xff] %v3800_v6   ;;  %v4396_v7 = vpop.f32.mrb[28].mxu0  ;;  %v4428_v8 = vpop.f32.mrb[28].mxu1 }
 0x205   : > { %v903_v9 = vadd.f32 %v4396_v7, %v5683_v56  ;;  %v894_v10 = vpop.f32.mrb[29].mxu0  ;;  %v1022_v11 = vpop.f32.mrb[29].mxu1  ;;  %v1031_v14 = vadd.f32 %v4428_v8, %v5683_v56 }
 0x206   : > { %v4397_v12 = vpop.f32.mrb[30].mxu0  ;;  %v4429_v13 = vpop.f32.mrb[30].mxu1  ;;  %v895_v19 = vadd.f32 %v5683_v56, %v894_v10  ;;  %v1023_v20 = vadd.f32 %v5683_v56, %v1022_v11 }
 0x207   : > { %v906_v15 = vadd.f32 %v4397_v12, %v5683_v56  ;;  %v1034_v16 = vadd.f32 %v4429_v13, %v5683_v56  ;;  %v897_v17 = vpop.f32.mrb[31].mxu0  ;;  %v1025_v18 = vpop.f32.mrb[31].mxu1 }
 0x208   : > { %v898_v21 = vadd.f32 %v5683_v56, %v897_v17  ;;  %v1026_v22 = vadd.f32 %v5683_v56, %v1025_v18 }
 0x209   : > { %v3735_v23 = vpack.c.bf16 %v906_v15, %v903_v9  ;;  %v3815_v24 = vpack.c.bf16 %v1034_v16, %v1031_v14 }
 0x20a   : > { %v3730_v25 = vpack.c.bf16 %v898_v21, %v895_v19  ;;  %v3810_v26 = vpack.c.bf16 %v1026_v22, %v1023_v20 }
 0x20b   : > { %4151 = vst [vmem:[%s5697_s30 + $0x78] sm:$0xff] %v3735_v23   ;;  %4167 = vst [vmem:[%s5697_s30 + $0xf8] sm:$0xff] %v3815_v24  }
 0x20c   : > { %4150 = vst [vmem:[%s5697_s30 + $0x70] sm:$0xff] %v3730_v25   ;;  %4166 = vst [vmem:[%s5697_s30 + $0xf0] sm:$0xff] %v3810_v26   ;;  %v4448_v28 = vpop.f32.mrb[32].mxu1  ;;  %v4528_v56 = vpop.f32.mrb[32].mxu0 }
 0x20d   : > { %v2343_v30 = vadd.f32 %v4528_v56, %v5786_v27  ;;  %v1558_v31 = vpop.f32.mrb[33].mxu1  ;;  %v2334_v32 = vpop.f32.mrb[33].mxu0  ;;  %v1567_v35 = vadd.f32 %v4448_v28, %v5795_v29 }
 0x20e   : > { %v4449_v33 = vpop.f32.mrb[34].mxu1  ;;  %v4529_v34 = vpop.f32.mrb[34].mxu0  ;;  %v1559_v40 = vadd.f32 %v5795_v29, %v1558_v31  ;;  %v2335_v41 = vadd.f32 %v5786_v27, %v2334_v32 }
 0x20f   : > { %v1570_v36 = vadd.f32 %v4449_v33, %v5795_v29  ;;  %v2346_v37 = vadd.f32 %v4529_v34, %v5786_v27  ;;  %v1561_v38 = vpop.f32.mrb[35].mxu1  ;;  %v2337_v39 = vpop.f32.mrb[35].mxu0 }
 0x210   : > { %v1562_v42 = vadd.f32 %v5795_v29, %v1561_v38  ;;  %v2338_v43 = vadd.f32 %v5786_v27, %v2337_v39 }
 0x211   : > { %v3825_v44 = vpack.c.bf16 %v1570_v36, %v1567_v35  ;;  %v3985_v45 = vpack.c.bf16 %v2346_v37, %v2343_v30 }
 0x212   : > { %v3820_v46 = vpack.c.bf16 %v1562_v42, %v1559_v40  ;;  %v3980_v47 = vpack.c.bf16 %v2338_v43, %v2335_v41 }
 0x213   : > { %4936 = shalt.err (!%p4933_p6)
}
 0x214   : > { %s4937_s30 = scalar_lea.hbm %s5808_s9, 4096  ;;  %s4941_s16 = scalar_lea.hbm %s6223_s10, 8192 }
 0x215   : > { %p4938_p7 = scmp.ne.s32.totalorder %s5808_s9, %s4937_s30  ;;  %p4942_p4 = scmp.lt.u32.totalorder %s5808_s9, %s6223_s10 }
 0x216   : > { %p4943_p12 = scmp.lt.u32.totalorder %s4941_s16, %s4937_s30  ;;  %p4945_p11 = scmp.lt.u32.totalorder %s4937_s30, %s5808_s9 }
 0x217   : > { %p4939_p9 = pnand %p4938_p7, %p6224_p10 }
 0x218   : > { %p4944_p2 = por %p4943_p12, %p4942_p4 }
 0x219   : > { %p4940_p8 = pneg %p4939_p9 }
 0x21a   : > { %p4946_p1 = por %p4945_p11, %p4944_p2 }
 0x21c   : > { %p4947_p0 = pnand %p4946_p1, %p4940_p8 }
 0x21e   : > { %4950 = shalt.err (!%p4947_p0)
}
 0x21f   : > { %s5090_s24 = smov 64   ;;  %s5091_s27 = smov 4   ;;  %v4452_v48 = vpop.f32.mrb[36].mxu1  ;;  %v4532_v49 = vpop.f32.mrb[36].mxu0 }
 0x220   : > { %4624 = dma.vmem_to_hbm [thread:$0]  (%p6224_p10), %s5815_s25, 4096, %s5808_s9, %s2910_s29, %s5090_s24, %s5090_s24, %s5091_s27   ;;  %v2359_v50 = vadd.f32 %v4532_v49, %v5786_v27  ;;  %v1574_v51 = vpop.f32.mrb[37].mxu1  ;;  %v2350_v52 = vpop.f32.mrb[37].mxu0  ;;  %v1583_v55 = vadd.f32 %v4452_v48, %v5795_v29 }
 0x221   : > { %s5845_s20 = scalar_lea.vmem [#allocation14], %s5687_s15  ;;  %s5849_s21 = scalar_lea.vmem [#allocation16], %s5687_s15  ;;  %v4453_v53 = vpop.f32.mrb[38].mxu1  ;;  %v4533_v54 = vpop.f32.mrb[38].mxu0  ;;  %v1575_v61 = vadd.f32 %v5795_v29, %v1574_v51  ;;  %v2351_v62 = vadd.f32 %v5786_v27, %v2350_v52 }
 0x222   : > { %4168 = vst [vmem:[%s5845_s20 + $0x8] sm:$0xff] %v3825_v44   ;;  %4199 = vst [vmem:[%s5849_s21 + $0x8] sm:$0xff] %v3985_v45   ;;  %v1586_v57 = vadd.f32 %v4453_v53, %v5795_v29  ;;  %v2362_v58 = vadd.f32 %v4533_v54, %v5786_v27  ;;  %v1577_v59 = vpop.f32.mrb[39].mxu1  ;;  %v2353_v60 = vpop.f32.mrb[39].mxu0  ;;  %s2953_s17 = sshll.u32 %s5845_s20, 4  ;;  %s2971_s15 = sshll.u32 %s5849_s21, 4  ;;  %s6038_s17 = int_to_ptr.vmem [resolvable:$true] %s2953_s17  ;;  %s6048_s15 = int_to_ptr.vmem [resolvable:$true] %s2971_s15 }
 0x223   : > { %3821 = vst [vmem:[%s5845_s20] sm:$0xff] %v3820_v46   ;;  %3981 = vst [vmem:[%s5849_s21] sm:$0xff] %v3980_v47   ;;  %v1578_v63 = vadd.f32 %v5795_v29, %v1577_v59  ;;  %v2354_v0 = vadd.f32 %v5786_v27, %v2353_v60  ;;  %v4456_v5 = vpop.f32.mrb[40].mxu1  ;;  %v4536_v6 = vpop.f32.mrb[40].mxu0  ;;  %s6225_s29 = sld [smem:[#allocation36_spill]]  ;;  %s6226_s13 = sld [smem:[#allocation37_spill]] }
 0x224   : > { %v3835_v1 = vpack.c.bf16 %v1586_v57, %v1583_v55  ;;  %v3995_v2 = vpack.c.bf16 %v2362_v58, %v2359_v50  ;;  %v2375_v7 = vadd.f32 %v4536_v6, %v5786_v27  ;;  %v1590_v8 = vpop.f32.mrb[41].mxu1  ;;  %v2366_v9 = vpop.f32.mrb[41].mxu0  ;;  %v1599_v12 = vadd.f32 %v4456_v5, %v5795_v29  ;;  %s6054_s28 = scalar_lea.sflag [#allocation15], %s490_s6  ;;  %s4951_s8 = scalar_lea.vmem %s6038_s17, 4096 }
 0x225   : > { %v3830_v3 = vpack.c.bf16 %v1578_v63, %v1575_v61  ;;  %v3990_v4 = vpack.c.bf16 %v2354_v0, %v2351_v62  ;;  %v4457_v10 = vpop.f32.mrb[42].mxu1  ;;  %v4537_v11 = vpop.f32.mrb[42].mxu0  ;;  %v1591_v17 = vadd.f32 %v5795_v29, %v1590_v8  ;;  %v2367_v18 = vadd.f32 %v5786_v27, %v2366_v9  ;;  %p4952_p13 = scmp.ne.s32.totalorder %s6038_s17, %s4951_s8  ;;  %s5092_s16 = smov [#allocation14]  }
 0x226   : > { %4170 = vst [vmem:[%s5845_s20 + $0x18] sm:$0xff] %v3835_v1   ;;  %4201 = vst [vmem:[%s5849_s21 + $0x18] sm:$0xff] %v3995_v2   ;;  %v1602_v13 = vadd.f32 %v4457_v10, %v5795_v29  ;;  %v2378_v14 = vadd.f32 %v4537_v11, %v5786_v27  ;;  %v1593_v15 = vpop.f32.mrb[43].mxu1  ;;  %v2369_v16 = vpop.f32.mrb[43].mxu0  ;;  %s4955_s1 = sshll.u32 %s5092_s16, 4  ;;  %s4956_s1 = int_to_ptr.vmem [resolvable:$false] %s4955_s1 }
 0x227   : > { %4169 = vst [vmem:[%s5845_s20 + $0x10] sm:$0xff] %v3830_v3   ;;  %4200 = vst [vmem:[%s5849_s21 + $0x10] sm:$0xff] %v3990_v4   ;;  %v1594_v19 = vadd.f32 %v5795_v29, %v1593_v15  ;;  %v2370_v20 = vadd.f32 %v5786_v27, %v2369_v16  ;;  %v4460_v25 = vpop.f32.mrb[44].mxu1  ;;  %v4540_v26 = vpop.f32.mrb[44].mxu0  ;;  %p4953_p5 = pnand %p4952_p13, %p6224_p10  ;;  %s4957_s22 = scalar_lea.vmem %s4956_s1, 8192 }
 0x228   : > { %v3845_v21 = vpack.c.bf16 %v1602_v13, %v1599_v12  ;;  %v4005_v22 = vpack.c.bf16 %v2378_v14, %v2375_v7  ;;  %v2391_v28 = vadd.f32 %v4540_v26, %v5786_v27  ;;  %v1606_v56 = vpop.f32.mrb[45].mxu1  ;;  %v2382_v30 = vpop.f32.mrb[45].mxu0  ;;  %v1615_v33 = vadd.f32 %v4460_v25, %v5795_v29  ;;  %p4958_p6 = scmp.lt.s32.totalorder %s6038_s17, %s4956_s1  ;;  %p4959_p7 = scmp.lt.s32.totalorder %s4957_s22, %s4951_s8 }
 0x229   : > { %v3840_v23 = vpack.c.bf16 %v1594_v19, %v1591_v17  ;;  %v4000_v24 = vpack.c.bf16 %v2370_v20, %v2367_v18  ;;  %v4461_v31 = vpop.f32.mrb[46].mxu1  ;;  %v4541_v32 = vpop.f32.mrb[46].mxu0  ;;  %v1607_v38 = vadd.f32 %v5795_v29, %v1606_v56  ;;  %v2383_v39 = vadd.f32 %v5786_v27, %v2382_v30  ;;  %s6036_s14 = scalar_lea.hbm %s6225_s29, %s5798_s11  ;;  %s6046_s30 = scalar_lea.hbm %s6226_s13, %s5798_s11 }
 0x22a   : > { %4172 = vst [vmem:[%s5845_s20 + $0x28] sm:$0xff] %v3845_v21   ;;  %4203 = vst [vmem:[%s5849_s21 + $0x28] sm:$0xff] %v4005_v22   ;;  %v1618_v34 = vadd.f32 %v4461_v31, %v5795_v29  ;;  %v2394_v35 = vadd.f32 %v4541_v32, %v5786_v27  ;;  %v1609_v36 = vpop.f32.mrb[47].mxu1  ;;  %v2385_v37 = vpop.f32.mrb[47].mxu0  ;;  %p4954_p3 = pneg %p4953_p5  ;;  %p4960_p9 = por %p4959_p7, %p4958_p6 }
 0x22b   : > { %4171 = vst [vmem:[%s5845_s20 + $0x20] sm:$0xff] %v3840_v23   ;;  %4202 = vst [vmem:[%s5849_s21 + $0x20] sm:$0xff] %v4000_v24   ;;  %v1610_v40 = vadd.f32 %v5795_v29, %v1609_v36  ;;  %v2386_v41 = vadd.f32 %v5786_v27, %v2385_v37 }
 0x22c   : > { %v3855_v42 = vpack.c.bf16 %v1618_v34, %v1615_v33  ;;  %v4015_v43 = vpack.c.bf16 %v2394_v35, %v2391_v28  ;;  %v4464_v46 = vpop.f32.mrb[48].mxu1  ;;  %v4544_v47 = vpop.f32.mrb[48].mxu0  ;;  %p4961_p8 = pnand %p4960_p9, %p4954_p3 }
 0x22d   : > { %v3850_v44 = vpack.c.bf16 %v1610_v40, %v1607_v38  ;;  %v4010_v45 = vpack.c.bf16 %v2386_v41, %v2383_v39  ;;  %v2407_v48 = vadd.f32 %v4544_v47, %v5786_v27  ;;  %v1622_v49 = vpop.f32.mrb[49].mxu1  ;;  %v2398_v50 = vpop.f32.mrb[49].mxu0  ;;  %v1631_v53 = vadd.f32 %v4464_v46, %v5795_v29 }
 0x22e   : > { %4174 = vst [vmem:[%s5845_s20 + $0x38] sm:$0xff] %v3855_v42   ;;  %4205 = vst [vmem:[%s5849_s21 + $0x38] sm:$0xff] %v4015_v43   ;;  %v4465_v51 = vpop.f32.mrb[50].mxu1  ;;  %v4545_v52 = vpop.f32.mrb[50].mxu0  ;;  %v1623_v59 = vadd.f32 %v5795_v29, %v1622_v49  ;;  %v2399_v60 = vadd.f32 %v5786_v27, %v2398_v50 }
 0x22f   : > { %4173 = vst [vmem:[%s5845_s20 + $0x30] sm:$0xff] %v3850_v44   ;;  %4204 = vst [vmem:[%s5849_s21 + $0x30] sm:$0xff] %v4010_v45   ;;  %v1634_v54 = vadd.f32 %v4465_v51, %v5795_v29  ;;  %v2410_v55 = vadd.f32 %v4545_v52, %v5786_v27  ;;  %v1625_v57 = vpop.f32.mrb[51].mxu1  ;;  %v2401_v58 = vpop.f32.mrb[51].mxu0 }
 0x230   : > { %v1626_v61 = vadd.f32 %v5795_v29, %v1625_v57  ;;  %v2402_v62 = vadd.f32 %v5786_v27, %v2401_v58 }
 0x231   : > { %v3865_v63 = vpack.c.bf16 %v1634_v54, %v1631_v53  ;;  %v4025_v0 = vpack.c.bf16 %v2410_v55, %v2407_v48 }
 0x232   : > { %v3860_v1 = vpack.c.bf16 %v1626_v61, %v1623_v59  ;;  %v4020_v2 = vpack.c.bf16 %v2402_v62, %v2399_v60 }
 0x233   : > { %4176 = vst [vmem:[%s5845_s20 + $0x48] sm:$0xff] %v3865_v63   ;;  %4207 = vst [vmem:[%s5849_s21 + $0x48] sm:$0xff] %v4025_v0  }
 0x234   : > { %4175 = vst [vmem:[%s5845_s20 + $0x40] sm:$0xff] %v3860_v1   ;;  %4206 = vst [vmem:[%s5849_s21 + $0x40] sm:$0xff] %v4020_v2   ;;  %v4468_v3 = vpop.f32.mrb[52].mxu1  ;;  %v4548_v4 = vpop.f32.mrb[52].mxu0 }
 0x235   : > { %v2423_v5 = vadd.f32 %v4548_v4, %v5786_v27  ;;  %v1638_v6 = vpop.f32.mrb[53].mxu1  ;;  %v2414_v7 = vpop.f32.mrb[53].mxu0  ;;  %v1647_v10 = vadd.f32 %v4468_v3, %v5795_v29 }
 0x236   : > { %v4469_v8 = vpop.f32.mrb[54].mxu1  ;;  %v4549_v9 = vpop.f32.mrb[54].mxu0  ;;  %v1639_v15 = vadd.f32 %v5795_v29, %v1638_v6  ;;  %v2415_v16 = vadd.f32 %v5786_v27, %v2414_v7 }
 0x237   : > { %v1650_v11 = vadd.f32 %v4469_v8, %v5795_v29  ;;  %v2426_v12 = vadd.f32 %v4549_v9, %v5786_v27  ;;  %v1641_v13 = vpop.f32.mrb[55].mxu1  ;;  %v2417_v14 = vpop.f32.mrb[55].mxu0 }
 0x238   : > { %v1642_v17 = vadd.f32 %v5795_v29, %v1641_v13  ;;  %v2418_v18 = vadd.f32 %v5786_v27, %v2417_v14 }
 0x239   : > { %v3875_v19 = vpack.c.bf16 %v1650_v11, %v1647_v10  ;;  %v4035_v20 = vpack.c.bf16 %v2426_v12, %v2423_v5 }
 0x23a   : > { %v3870_v21 = vpack.c.bf16 %v1642_v17, %v1639_v15  ;;  %v4030_v22 = vpack.c.bf16 %v2418_v18, %v2415_v16 }
 0x23b   : > { %4178 = vst [vmem:[%s5845_s20 + $0x58] sm:$0xff] %v3875_v19   ;;  %4209 = vst [vmem:[%s5849_s21 + $0x58] sm:$0xff] %v4035_v20  }
 0x23c   : > { %4177 = vst [vmem:[%s5845_s20 + $0x50] sm:$0xff] %v3870_v21   ;;  %4208 = vst [vmem:[%s5849_s21 + $0x50] sm:$0xff] %v4030_v22   ;;  %v4472_v23 = vpop.f32.mrb[56].mxu1  ;;  %v4552_v24 = vpop.f32.mrb[56].mxu0 }
 0x23d   : > { %v2439_v25 = vadd.f32 %v4552_v24, %v5786_v27  ;;  %v1654_v26 = vpop.f32.mrb[57].mxu1  ;;  %v2430_v28 = vpop.f32.mrb[57].mxu0  ;;  %v1663_v31 = vadd.f32 %v4472_v23, %v5795_v29 }
 0x23e   : > { %v4473_v56 = vpop.f32.mrb[58].mxu1  ;;  %v4553_v30 = vpop.f32.mrb[58].mxu0  ;;  %v1655_v36 = vadd.f32 %v5795_v29, %v1654_v26  ;;  %v2431_v37 = vadd.f32 %v5786_v27, %v2430_v28 }
 0x23f   : > { %v1666_v32 = vadd.f32 %v4473_v56, %v5795_v29  ;;  %v2442_v33 = vadd.f32 %v4553_v30, %v5786_v27  ;;  %v1657_v34 = vpop.f32.mrb[59].mxu1  ;;  %v2433_v35 = vpop.f32.mrb[59].mxu0 }
 0x240   : > { %v1658_v38 = vadd.f32 %v5795_v29, %v1657_v34  ;;  %v2434_v39 = vadd.f32 %v5786_v27, %v2433_v35 }
 0x241   : > { %v3885_v40 = vpack.c.bf16 %v1666_v32, %v1663_v31  ;;  %v4045_v41 = vpack.c.bf16 %v2442_v33, %v2439_v25 }
 0x242   : > { %v3880_v42 = vpack.c.bf16 %v1658_v38, %v1655_v36  ;;  %v4040_v43 = vpack.c.bf16 %v2434_v39, %v2431_v37 }
 0x243   : > { %4180 = vst [vmem:[%s5845_s20 + $0x68] sm:$0xff] %v3885_v40   ;;  %4211 = vst [vmem:[%s5849_s21 + $0x68] sm:$0xff] %v4045_v41  }
 0x244   : > { %4179 = vst [vmem:[%s5845_s20 + $0x60] sm:$0xff] %v3880_v42   ;;  %4210 = vst [vmem:[%s5849_s21 + $0x60] sm:$0xff] %v4040_v43   ;;  %v4476_v44 = vpop.f32.mrb[60].mxu1  ;;  %v4556_v45 = vpop.f32.mrb[60].mxu0 }
 0x245   : > { %v2455_v46 = vadd.f32 %v4556_v45, %v5786_v27  ;;  %v1670_v47 = vpop.f32.mrb[61].mxu1  ;;  %v2446_v48 = vpop.f32.mrb[61].mxu0  ;;  %v1679_v51 = vadd.f32 %v4476_v44, %v5795_v29 }
 0x246   : > { %v4477_v49 = vpop.f32.mrb[62].mxu1  ;;  %v4557_v50 = vpop.f32.mrb[62].mxu0  ;;  %v1671_v57 = vadd.f32 %v5795_v29, %v1670_v47  ;;  %v2447_v58 = vadd.f32 %v5786_v27, %v2446_v48 }
 0x247   : > { %v1682_v52 = vadd.f32 %v4477_v49, %v5795_v29  ;;  %v2458_v53 = vadd.f32 %v4557_v50, %v5786_v27  ;;  %v1673_v54 = vpop.f32.mrb[63].mxu1  ;;  %v2449_v55 = vpop.f32.mrb[63].mxu0 }
 0x248   : > { %v1674_v59 = vadd.f32 %v5795_v29, %v1673_v54  ;;  %v2450_v60 = vadd.f32 %v5786_v27, %v2449_v55 }
 0x249   : > { %v3895_v61 = vpack.c.bf16 %v1682_v52, %v1679_v51  ;;  %v4055_v62 = vpack.c.bf16 %v2458_v53, %v2455_v46 }
 0x24a   : > { %v3890_v63 = vpack.c.bf16 %v1674_v59, %v1671_v57  ;;  %v4050_v0 = vpack.c.bf16 %v2450_v60, %v2447_v58 }
 0x24b   : > { %4182 = vst [vmem:[%s5845_s20 + $0x78] sm:$0xff] %v3895_v61   ;;  %4213 = vst [vmem:[%s5849_s21 + $0x78] sm:$0xff] %v4055_v62  }
 0x24c   : > { %4181 = vst [vmem:[%s5845_s20 + $0x70] sm:$0xff] %v3890_v63   ;;  %4212 = vst [vmem:[%s5849_s21 + $0x70] sm:$0xff] %v4050_v0   ;;  %v4480_v1 = vpop.f32.mrb[64].mxu1  ;;  %v4560_v2 = vpop.f32.mrb[64].mxu0 }
 0x24d   : > { %v2471_v3 = vadd.f32 %v4560_v2, %v5786_v27  ;;  %v1686_v4 = vpop.f32.mrb[65].mxu1  ;;  %v2462_v5 = vpop.f32.mrb[65].mxu0  ;;  %v1695_v8 = vadd.f32 %v4480_v1, %v5795_v29 }
 0x24e   : > { %v4481_v6 = vpop.f32.mrb[66].mxu1  ;;  %v4561_v7 = vpop.f32.mrb[66].mxu0  ;;  %v1687_v13 = vadd.f32 %v5795_v29, %v1686_v4  ;;  %v2463_v14 = vadd.f32 %v5786_v27, %v2462_v5 }
 0x24f   : > { %v1698_v9 = vadd.f32 %v4481_v6, %v5795_v29  ;;  %v2474_v10 = vadd.f32 %v4561_v7, %v5786_v27  ;;  %v1689_v11 = vpop.f32.mrb[67].mxu1  ;;  %v2465_v12 = vpop.f32.mrb[67].mxu0 }
 0x250   : > { %v1690_v15 = vadd.f32 %v5795_v29, %v1689_v11  ;;  %v2466_v16 = vadd.f32 %v5786_v27, %v2465_v12 }
 0x251   : > { %v3905_v17 = vpack.c.bf16 %v1698_v9, %v1695_v8  ;;  %v4065_v18 = vpack.c.bf16 %v2474_v10, %v2471_v3 }
 0x252   : > { %v3900_v19 = vpack.c.bf16 %v1690_v15, %v1687_v13  ;;  %v4060_v20 = vpack.c.bf16 %v2466_v16, %v2463_v14 }
 0x253   : > { %4184 = vst [vmem:[%s5845_s20 + $0x88] sm:$0xff] %v3905_v17   ;;  %4215 = vst [vmem:[%s5849_s21 + $0x88] sm:$0xff] %v4065_v18  }
 0x254   : > { %4183 = vst [vmem:[%s5845_s20 + $0x80] sm:$0xff] %v3900_v19   ;;  %4214 = vst [vmem:[%s5849_s21 + $0x80] sm:$0xff] %v4060_v20   ;;  %v4484_v21 = vpop.f32.mrb[68].mxu1  ;;  %v4564_v22 = vpop.f32.mrb[68].mxu0 }
 0x255   : > { %v2487_v23 = vadd.f32 %v4564_v22, %v5786_v27  ;;  %v1702_v24 = vpop.f32.mrb[69].mxu1  ;;  %v2478_v25 = vpop.f32.mrb[69].mxu0  ;;  %v1711_v56 = vadd.f32 %v4484_v21, %v5795_v29 }
 0x256   : > { %v4485_v26 = vpop.f32.mrb[70].mxu1  ;;  %v4565_v28 = vpop.f32.mrb[70].mxu0  ;;  %v1703_v34 = vadd.f32 %v5795_v29, %v1702_v24  ;;  %v2479_v35 = vadd.f32 %v5786_v27, %v2478_v25 }
 0x257   : > { %v1714_v30 = vadd.f32 %v4485_v26, %v5795_v29  ;;  %v2490_v31 = vadd.f32 %v4565_v28, %v5786_v27  ;;  %v1705_v32 = vpop.f32.mrb[71].mxu1  ;;  %v2481_v33 = vpop.f32.mrb[71].mxu0 }
 0x258   : > { %v1706_v36 = vadd.f32 %v5795_v29, %v1705_v32  ;;  %v2482_v37 = vadd.f32 %v5786_v27, %v2481_v33 }
 0x259   : > { %v3915_v38 = vpack.c.bf16 %v1714_v30, %v1711_v56  ;;  %v4075_v39 = vpack.c.bf16 %v2490_v31, %v2487_v23 }
 0x25a   : > { %v3910_v40 = vpack.c.bf16 %v1706_v36, %v1703_v34  ;;  %v4070_v41 = vpack.c.bf16 %v2482_v37, %v2479_v35 }
 0x25b   : > { %4186 = vst [vmem:[%s5845_s20 + $0x98] sm:$0xff] %v3915_v38   ;;  %4217 = vst [vmem:[%s5849_s21 + $0x98] sm:$0xff] %v4075_v39  }
 0x25c   : > { %4185 = vst [vmem:[%s5845_s20 + $0x90] sm:$0xff] %v3910_v40   ;;  %4216 = vst [vmem:[%s5849_s21 + $0x90] sm:$0xff] %v4070_v41   ;;  %v4488_v42 = vpop.f32.mrb[72].mxu1  ;;  %v4568_v43 = vpop.f32.mrb[72].mxu0 }
 0x25d   : > { %v2503_v44 = vadd.f32 %v4568_v43, %v5786_v27  ;;  %v1718_v45 = vpop.f32.mrb[73].mxu1  ;;  %v2494_v46 = vpop.f32.mrb[73].mxu0  ;;  %v1727_v49 = vadd.f32 %v4488_v42, %v5795_v29 }
 0x25e   : > { %v4489_v47 = vpop.f32.mrb[74].mxu1  ;;  %v4569_v48 = vpop.f32.mrb[74].mxu0  ;;  %v1719_v54 = vadd.f32 %v5795_v29, %v1718_v45  ;;  %v2495_v55 = vadd.f32 %v5786_v27, %v2494_v46 }
 0x25f   : > { %v1730_v50 = vadd.f32 %v4489_v47, %v5795_v29  ;;  %v2506_v51 = vadd.f32 %v4569_v48, %v5786_v27  ;;  %v1721_v52 = vpop.f32.mrb[75].mxu1  ;;  %v2497_v53 = vpop.f32.mrb[75].mxu0 }
 0x260   : > { %v1722_v57 = vadd.f32 %v5795_v29, %v1721_v52  ;;  %v2498_v58 = vadd.f32 %v5786_v27, %v2497_v53 }
 0x261   : > { %v3925_v59 = vpack.c.bf16 %v1730_v50, %v1727_v49  ;;  %v4085_v60 = vpack.c.bf16 %v2506_v51, %v2503_v44 }
 0x262   : > { %v3920_v61 = vpack.c.bf16 %v1722_v57, %v1719_v54  ;;  %v4080_v62 = vpack.c.bf16 %v2498_v58, %v2495_v55 }
 0x263   : > { %4188 = vst [vmem:[%s5845_s20 + $0xa8] sm:$0xff] %v3925_v59   ;;  %4219 = vst [vmem:[%s5849_s21 + $0xa8] sm:$0xff] %v4085_v60  }
 0x264   : > { %4187 = vst [vmem:[%s5845_s20 + $0xa0] sm:$0xff] %v3920_v61   ;;  %4218 = vst [vmem:[%s5849_s21 + $0xa0] sm:$0xff] %v4080_v62   ;;  %v4492_v63 = vpop.f32.mrb[76].mxu1  ;;  %v4572_v0 = vpop.f32.mrb[76].mxu0 }
 0x265   : > { %v2519_v1 = vadd.f32 %v4572_v0, %v5786_v27  ;;  %v1734_v2 = vpop.f32.mrb[77].mxu1  ;;  %v2510_v3 = vpop.f32.mrb[77].mxu0  ;;  %v1743_v6 = vadd.f32 %v4492_v63, %v5795_v29 }
 0x266   : > { %v4493_v4 = vpop.f32.mrb[78].mxu1  ;;  %v4573_v5 = vpop.f32.mrb[78].mxu0  ;;  %v1735_v11 = vadd.f32 %v5795_v29, %v1734_v2  ;;  %v2511_v12 = vadd.f32 %v5786_v27, %v2510_v3 }
 0x267   : > { %v1746_v7 = vadd.f32 %v4493_v4, %v5795_v29  ;;  %v2522_v8 = vadd.f32 %v4573_v5, %v5786_v27  ;;  %v1737_v9 = vpop.f32.mrb[79].mxu1  ;;  %v2513_v10 = vpop.f32.mrb[79].mxu0 }
 0x268   : > { %v1738_v13 = vadd.f32 %v5795_v29, %v1737_v9  ;;  %v2514_v14 = vadd.f32 %v5786_v27, %v2513_v10 }
 0x269   : > { %v3935_v15 = vpack.c.bf16 %v1746_v7, %v1743_v6  ;;  %v4095_v16 = vpack.c.bf16 %v2522_v8, %v2519_v1 }
 0x26a   : > { %v3930_v17 = vpack.c.bf16 %v1738_v13, %v1735_v11  ;;  %v4090_v18 = vpack.c.bf16 %v2514_v14, %v2511_v12 }
 0x26b   : > { %4190 = vst [vmem:[%s5845_s20 + $0xb8] sm:$0xff] %v3935_v15   ;;  %4221 = vst [vmem:[%s5849_s21 + $0xb8] sm:$0xff] %v4095_v16  }
 0x26c   : > { %4189 = vst [vmem:[%s5845_s20 + $0xb0] sm:$0xff] %v3930_v17   ;;  %4220 = vst [vmem:[%s5849_s21 + $0xb0] sm:$0xff] %v4090_v18   ;;  %v4496_v19 = vpop.f32.mrb[80].mxu1  ;;  %v4576_v20 = vpop.f32.mrb[80].mxu0 }
 0x26d   : > { %v2535_v21 = vadd.f32 %v4576_v20, %v5786_v27  ;;  %v1750_v22 = vpop.f32.mrb[81].mxu1  ;;  %v2526_v23 = vpop.f32.mrb[81].mxu0  ;;  %v1759_v26 = vadd.f32 %v4496_v19, %v5795_v29 }
 0x26e   : > { %v4497_v24 = vpop.f32.mrb[82].mxu1  ;;  %v4577_v25 = vpop.f32.mrb[82].mxu0  ;;  %v1751_v32 = vadd.f32 %v5795_v29, %v1750_v22  ;;  %v2527_v33 = vadd.f32 %v5786_v27, %v2526_v23 }
 0x26f   : > { %v1762_v28 = vadd.f32 %v4497_v24, %v5795_v29  ;;  %v2538_v56 = vadd.f32 %v4577_v25, %v5786_v27  ;;  %v1753_v30 = vpop.f32.mrb[83].mxu1  ;;  %v2529_v31 = vpop.f32.mrb[83].mxu0 }
 0x270   : > { %v1754_v34 = vadd.f32 %v5795_v29, %v1753_v30  ;;  %v2530_v35 = vadd.f32 %v5786_v27, %v2529_v31 }
 0x271   : > { %v3945_v36 = vpack.c.bf16 %v1762_v28, %v1759_v26  ;;  %v4105_v37 = vpack.c.bf16 %v2538_v56, %v2535_v21 }
 0x272   : > { %v3940_v38 = vpack.c.bf16 %v1754_v34, %v1751_v32  ;;  %v4100_v39 = vpack.c.bf16 %v2530_v35, %v2527_v33 }
 0x273   : > { %4192 = vst [vmem:[%s5845_s20 + $0xc8] sm:$0xff] %v3945_v36   ;;  %4223 = vst [vmem:[%s5849_s21 + $0xc8] sm:$0xff] %v4105_v37  }
 0x274   : > { %4191 = vst [vmem:[%s5845_s20 + $0xc0] sm:$0xff] %v3940_v38   ;;  %4222 = vst [vmem:[%s5849_s21 + $0xc0] sm:$0xff] %v4100_v39   ;;  %v4500_v40 = vpop.f32.mrb[84].mxu1  ;;  %v4580_v41 = vpop.f32.mrb[84].mxu0 }
 0x275   : > { %v2551_v42 = vadd.f32 %v4580_v41, %v5786_v27  ;;  %v1766_v43 = vpop.f32.mrb[85].mxu1  ;;  %v2542_v44 = vpop.f32.mrb[85].mxu0  ;;  %v1775_v47 = vadd.f32 %v4500_v40, %v5795_v29 }
 0x276   : > { %v4501_v45 = vpop.f32.mrb[86].mxu1  ;;  %v4581_v46 = vpop.f32.mrb[86].mxu0  ;;  %v1767_v52 = vadd.f32 %v5795_v29, %v1766_v43  ;;  %v2543_v53 = vadd.f32 %v5786_v27, %v2542_v44 }
 0x277   : > { %v1778_v48 = vadd.f32 %v4501_v45, %v5795_v29  ;;  %v2554_v49 = vadd.f32 %v4581_v46, %v5786_v27  ;;  %v1769_v50 = vpop.f32.mrb[87].mxu1  ;;  %v2545_v51 = vpop.f32.mrb[87].mxu0 }
 0x278   : > { %v1770_v54 = vadd.f32 %v5795_v29, %v1769_v50  ;;  %v2546_v55 = vadd.f32 %v5786_v27, %v2545_v51 }
 0x279   : > { %v3955_v57 = vpack.c.bf16 %v1778_v48, %v1775_v47  ;;  %v4115_v58 = vpack.c.bf16 %v2554_v49, %v2551_v42 }
 0x27a   : > { %v3950_v59 = vpack.c.bf16 %v1770_v54, %v1767_v52  ;;  %v4110_v60 = vpack.c.bf16 %v2546_v55, %v2543_v53 }
 0x27b   : > { %4194 = vst [vmem:[%s5845_s20 + $0xd8] sm:$0xff] %v3955_v57   ;;  %4225 = vst [vmem:[%s5849_s21 + $0xd8] sm:$0xff] %v4115_v58  }
 0x27c   : > { %4193 = vst [vmem:[%s5845_s20 + $0xd0] sm:$0xff] %v3950_v59   ;;  %4224 = vst [vmem:[%s5849_s21 + $0xd0] sm:$0xff] %v4110_v60   ;;  %v4504_v61 = vpop.f32.mrb[88].mxu1  ;;  %v4584_v62 = vpop.f32.mrb[88].mxu0 }
 0x27d   : > { %v2567_v63 = vadd.f32 %v4584_v62, %v5786_v27  ;;  %v1782_v0 = vpop.f32.mrb[89].mxu1  ;;  %v2558_v1 = vpop.f32.mrb[89].mxu0  ;;  %v1791_v4 = vadd.f32 %v4504_v61, %v5795_v29 }
 0x27e   : > { %v4505_v2 = vpop.f32.mrb[90].mxu1  ;;  %v4585_v3 = vpop.f32.mrb[90].mxu0  ;;  %v1783_v9 = vadd.f32 %v5795_v29, %v1782_v0  ;;  %v2559_v10 = vadd.f32 %v5786_v27, %v2558_v1 }
 0x27f   : > { %v1794_v5 = vadd.f32 %v4505_v2, %v5795_v29  ;;  %v2570_v6 = vadd.f32 %v4585_v3, %v5786_v27  ;;  %v1785_v7 = vpop.f32.mrb[91].mxu1  ;;  %v2561_v8 = vpop.f32.mrb[91].mxu0 }
 0x280   : > { %v1786_v11 = vadd.f32 %v5795_v29, %v1785_v7  ;;  %v2562_v12 = vadd.f32 %v5786_v27, %v2561_v8 }
 0x281   : > { %v3965_v13 = vpack.c.bf16 %v1794_v5, %v1791_v4  ;;  %v4125_v14 = vpack.c.bf16 %v2570_v6, %v2567_v63 }
 0x282   : > { %v3960_v15 = vpack.c.bf16 %v1786_v11, %v1783_v9  ;;  %v4120_v16 = vpack.c.bf16 %v2562_v12, %v2559_v10 }
 0x283   : > { %4196 = vst [vmem:[%s5845_s20 + $0xe8] sm:$0xff] %v3965_v13   ;;  %4227 = vst [vmem:[%s5849_s21 + $0xe8] sm:$0xff] %v4125_v14  }
 0x284   : > { %4195 = vst [vmem:[%s5845_s20 + $0xe0] sm:$0xff] %v3960_v15   ;;  %4226 = vst [vmem:[%s5849_s21 + $0xe0] sm:$0xff] %v4120_v16   ;;  %v4508_v17 = vpop.f32.mrb[92].mxu1  ;;  %v4588_v18 = vpop.f32.mrb[92].mxu0 }
 0x285   : > { %v2583_v19 = vadd.f32 %v4588_v18, %v5786_v27  ;;  %v1798_v20 = vpop.f32.mrb[93].mxu1  ;;  %v2574_v21 = vpop.f32.mrb[93].mxu0  ;;  %v1807_v24 = vadd.f32 %v4508_v17, %v5795_v29 }
 0x286   : > { %v4509_v22 = vpop.f32.mrb[94].mxu1  ;;  %v4589_v23 = vpop.f32.mrb[94].mxu0  ;;  %v1799_v30 = vadd.f32 %v5795_v29, %v1798_v20  ;;  %v2575_v31 = vadd.f32 %v5786_v27, %v2574_v21 }
 0x287   : > { %v1810_v25 = vadd.f32 %v4509_v22, %v5795_v29  ;;  %v2586_v26 = vadd.f32 %v4589_v23, %v5786_v27  ;;  %v1801_v28 = vpop.f32.mrb[95].mxu1  ;;  %v2577_v56 = vpop.f32.mrb[95].mxu0 }
 0x288   : > { %v1802_v32 = vadd.f32 %v5795_v29, %v1801_v28  ;;  %v2578_v33 = vadd.f32 %v5786_v27, %v2577_v56 }
 0x289   : > { %v3975_v34 = vpack.c.bf16 %v1810_v25, %v1807_v24  ;;  %v4135_v35 = vpack.c.bf16 %v2586_v26, %v2583_v19 }
 0x28a   : > { %v3970_v36 = vpack.c.bf16 %v1802_v32, %v1799_v30  ;;  %v4130_v37 = vpack.c.bf16 %v2578_v33, %v2575_v31 }
 0x28b   : > { %4198 = vst [vmem:[%s5845_s20 + $0xf8] sm:$0xff] %v3975_v34   ;;  %4229 = vst [vmem:[%s5849_s21 + $0xf8] sm:$0xff] %v4135_v35  }
 0x28c   : > { %4197 = vst [vmem:[%s5845_s20 + $0xf0] sm:$0xff] %v3970_v36   ;;  %4228 = vst [vmem:[%s5849_s21 + $0xf0] sm:$0xff] %v4130_v37  }
 0x28d   : > { %4964 = shalt.err (!%p4961_p8)
}
 0x28e   : > { %s4965_s23 = scalar_lea.hbm %s6036_s14, 4096  ;;  %s4969_s20 = scalar_lea.hbm %s6225_s29, 8192 }
 0x28f   : > { %p4966_p4 = scmp.ne.s32.totalorder %s6036_s14, %s4965_s23  ;;  %p4970_p11 = scmp.lt.u32.totalorder %s6036_s14, %s6225_s29 }
 0x290   : > { %p4971_p1 = scmp.lt.u32.totalorder %s4969_s20, %s4965_s23  ;;  %p4973_p13 = scmp.lt.u32.totalorder %s4965_s23, %s6036_s14 }
 0x291   : > { %p4967_p12 = pnand %p4966_p4, %p6224_p10 }
 0x292   : > { %p4972_p0 = por %p4971_p1, %p4970_p11 }
 0x293   : > { %p4968_p2 = pneg %p4967_p12 }
 0x294   : > { %p4974_p5 = por %p4973_p13, %p4972_p0 }
 0x296   : > { %p4975_p3 = pnand %p4974_p5, %p4968_p2 }
 0x298   : > { %4978 = shalt.err (!%p4975_p3)
}
 0x299   : > { %4625 = dma.vmem_to_hbm [thread:$0]  (%p6224_p10), %s6038_s17, 4096, %s6036_s14, %s6054_s28, %s5090_s24, %s5090_s24, %s5091_s27  }
 0x29a   : > { %s4979_s25 = scalar_lea.vmem %s6048_s15, 4096  ;;  %s5093_s12 = smov [#allocation16]  }
 0x29b   : > { %p4980_p6 = scmp.ne.s32.totalorder %s6048_s15, %s4979_s25  ;;  %s4983_s26 = sshll.u32 %s5093_s12, 4  ;;  %s4984_s26 = int_to_ptr.vmem [resolvable:$false] %s4983_s26 }
 0x29c   : > { %s4985_s8 = scalar_lea.vmem %s4984_s26, 8192  ;;  %p4986_p8 = scmp.lt.s32.totalorder %s6048_s15, %s4984_s26 }
 0x29d   : > { %p4981_p7 = pnand %p4980_p6, %p6224_p10  ;;  %p4987_p4 = scmp.lt.s32.totalorder %s4985_s8, %s4979_s25 }
 0x29f   : > { %p4982_p9 = pneg %p4981_p7  ;;  %p4988_p12 = por %p4987_p4, %p4986_p8 }
 0x2a1   : > { %p4989_p2 = pnand %p4988_p12, %p4982_p9 }
 0x2a3   : > { %4992 = shalt.err (!%p4989_p2)
}
 0x2a4   : > { %s4993_s17 = scalar_lea.hbm %s6046_s30, 4096  ;;  %s4997_s1 = scalar_lea.hbm %s6226_s13, 8192 }
 0x2a5   : > { %p4994_p11 = scmp.ne.s32.totalorder %s6046_s30, %s4993_s17  ;;  %p4998_p13 = scmp.lt.u32.totalorder %s6046_s30, %s6226_s13 }
 0x2a6   : > { %p4999_p5 = scmp.lt.u32.totalorder %s4997_s1, %s4993_s17  ;;  %p5001_p6 = scmp.lt.u32.totalorder %s4993_s17, %s6046_s30 }
 0x2a7   : > { %p4995_p1 = pnand %p4994_p11, %p6224_p10 }
 0x2a8   : > { %p5000_p3 = por %p4999_p5, %p4998_p13 }
 0x2a9   : > { %p4996_p0 = pneg %p4995_p1 }
 0x2aa   : > { %p5002_p7 = por %p5001_p6, %p5000_p3 }
 0x2ac   : > { %p5003_p9 = pnand %p5002_p7, %p4996_p0 }
 0x2ae   : > { %5006 = shalt.err (!%p5003_p9)
}
 0x2af   : > { %4626 = dma.vmem_to_hbm [thread:$0]  (%p6224_p10), %s6048_s15, 4096, %s6046_s30, %s6054_s28, %s5090_s24, %s5090_s24, %s5091_s27  }
 0x2b0 PF: > { %s6227_s6 = sld [smem:[#allocation23_spill]]  ;;  %s6228_s11 = sld [smem:[#allocation28_spill]] }
 0x2b1   : > { %s6229_s20 = sld [smem:[#allocation26_spill]] }
 0x2b6   : > { %s2986_s21 = sand.u32 1, %s6227_s6   ;;  %p6230_p8 = scmp.ne.s32.totalorder %s6228_s11, 0 }
 0x2b7   : > { %p6231_p4 = scmp.ge.s32.totalorder %s6229_s20, 2  ;;  %s2987_s9 = scalar_lea.sflag [#allocation4], %s2986_s21 }
 0x2b9   : > { %p4651_p12 = pnand %p6231_p4, %p6230_p8 }
 0x2bb   : > { %5048 = dma.done.wait (!%p4651_p12), %s2987_s9, 4096  }
 0x2bc   : > { %5050 = vsyncadd (!%p4651_p12), %s2987_s9, 4294963200  ;;  %s6232_s3 = sadd.s32 4294967294, %s6229_s20  }
 0x2bd   : > { %s2995_s25 = sand.u32 1, %s6232_s3  }
 0x2be   : > { %s2996_s12 = scalar_lea.sflag [#allocation15], %s2995_s25 }
 0x2bf   : > { %5052 = dma.done.wait (!%p4651_p12), %s2996_s12, 8192  }
 0x2c0   : > { %5054 = vsyncadd (!%p4651_p12), %s2996_s12, 4294959104  ;;  %s36_s22 = sadd.s32 1, %s6229_s20   ;;  %s6233_s24 = sld [smem:[#allocation30_spill]] }
 0x2c1   : > { %p33_p10 = scmp.ge.s32.totalorder %s36_s22, 4   ;;  %s6234_s20 = sld [smem:[#allocation25_spill]] }
 0x2c2   : > { %s6235_s21 = sld [smem:[#allocation29_spill]]  ;;  %s6236_s17 = smov %s5061_s18 }
 0x2c3   : > { %s6237_s18 = smov %s5065_s19  ;;  %35 = sbr.rel (!%p33_p10) target bundleno = 20 (0x14), region = 169 }
 0x2c6   : > { %s6238_s19 = smov %s6233_s24 }
 0x2ca   :  { %3010 = vsyncpa [#allocation3], 1 }
 0x2cb   :  { %3012 = vsyncpa [#allocation3 + $0x1], 1 }
 0x2cc   :  { %3013 = vsyncpa [#allocation6], 1 }
 0x2cd   :  { %3015 = vsyncpa [#allocation6 + $0x1], 1 }
 0x2ce   :  { %3016 = vsyncpa [#allocation9], 1 }
 0x2cf   :  { %3017 = vsyncpa [#allocation12], 1 }
 0x2d0   :  { %3018 = vsyncpa [#allocation4], 1 }
 0x2d1   :  { %3020 = vsyncpa [#allocation4 + $0x1], 1 }
 0x2d2   :  { %3021 = vsyncpa [#allocation15], 1 }
 0x2d3   :  { %3023 = vsyncpa [#allocation15 + $0x1], 1 }

</bundles_post_ra>
